<compile_context>
chip_gen: v6e
topology: v6e:2x2x1
jax: 0.10.0
libtpu: 0.0.40
codegen_flags: <defaults>
</compile_context>

<pallas_src>
import functools
import math

import numpy as np
import jax
import jax.numpy as jnp
from jax.experimental import pallas as pl
from jax.experimental.pallas import tpu as pltpu


# ----------------------------------------------------------------------------
# Pallas kernels
# ----------------------------------------------------------------------------

def _corr_kernel(q_ref, vt_ref, o_ref, *, scale, t, hw4):
    # q_ref: (1, tq, K9p) bf16 ; vt_ref: (1, K9p, t*hw4) bf16 ; o_ref: (1, tq, t*hw4) f32
    q = q_ref[0]
    vt = vt_ref[0]
    s = jnp.dot(q, vt, preferred_element_type=jnp.float32) * scale   # (tq, t*hw4)
    # per-frame softmax over contiguous hw4-wide column groups
    segs = []
    for g in range(t):
        seg = s[:, g * hw4:(g + 1) * hw4]
        m = jnp.max(seg, axis=-1, keepdims=True)
        e = jnp.exp(seg - m)
        d = jnp.sum(e, axis=-1, keepdims=True)
        segs.append(e * pl.reciprocal(d, approx=True))
    o_ref[0] = jnp.concatenate(segs, axis=-1)                        # one wide store


def correlation_softmax(q_patch, vt, scale, t, hw4, tq=128):
    """q_patch: (N, Lq, K9p) bf16; vt: (N, K9p, t*hw4) bf16 -> prob (N, Lq, t*hw4) f32."""
    N, Lq, K9p = q_patch.shape
    T4 = vt.shape[-1]
    assert T4 == t * hw4 and Lq % tq == 0
    return pl.pallas_call(
        functools.partial(_corr_kernel, scale=scale, t=t, hw4=hw4),
        out_shape=jax.ShapeDtypeStruct((N, Lq, T4), jnp.float32),
        grid_spec=pltpu.PrefetchScalarGridSpec(
            num_scalar_prefetch=0,
            grid=(N, Lq // tq),
            in_specs=[
                pl.BlockSpec((1, tq, K9p), lambda n, i: (n, i, 0)),
                pl.BlockSpec((1, K9p, T4), lambda n, i: (n, 0, 0)),
            ],
            out_specs=pl.BlockSpec((1, tq, T4), lambda n, i: (n, i, 0)),
        ),
        compiler_params=pltpu.CompilerParams(
            dimension_semantics=("parallel", "parallel")),
    )(q_patch, vt)


def _linear_kernel(x_ref, w_ref, b_ref, o_ref):
    o_ref[...] = (jnp.dot(x_ref[...], w_ref[...],
                          preferred_element_type=jnp.float32) + b_ref[...])


def linear(x, w, b):
    """x: (R, d_in); w: (d_in, d_out); b: (1, d_out) -> (R, d_out)."""
    R, d_in = x.shape
    d_out = w.shape[1]
    # few big grid steps (>=2 so both v7x TensorCores get work)
    tm = R // 2 if (R % 2 == 0 and (R // 2) % 8 == 0) else R
    return pl.pallas_call(
        _linear_kernel,
        out_shape=jax.ShapeDtypeStruct((R, d_out), jnp.float32),
        grid_spec=pltpu.PrefetchScalarGridSpec(
            num_scalar_prefetch=0,
            grid=(R // tm,),
            in_specs=[
                pl.BlockSpec((tm, d_in), lambda i: (i, 0)),
                pl.BlockSpec((d_in, d_out), lambda i: (0, 0)),
                pl.BlockSpec((1, d_out), lambda i: (0, 0)),
            ],
            out_specs=pl.BlockSpec((tm, d_out), lambda i: (i, 0)),
        ),
        compiler_params=pltpu.CompilerParams(dimension_semantics=("parallel",)),
    )(x, w, b)


def _deform_kernel(a_ref, v_ref, o_ref):
    # a_ref: (1, M, Lq, S) bf16 ; v_ref: (1, M, S, D) bf16 ; o_ref: (1, Lq, M*D) f32
    M = a_ref.shape[1]
    outs = [jnp.dot(a_ref[0, m], v_ref[0, m], preferred_element_type=jnp.float32)
            for m in range(M)]
    o_ref[0] = jnp.concatenate(outs, axis=-1)       # lane-dense (Lq, M*D) store


def deform_aggregate(A, V):
    """A: (N, M, Lq, S) bf16; V: (N, M, S, D) bf16 -> (N, Lq, M*D) f32 (head-major)."""
    N, M, Lq, S = A.shape
    D = V.shape[-1]
    return pl.pallas_call(
        _deform_kernel,
        out_shape=jax.ShapeDtypeStruct((N, Lq, M * D), jnp.float32),
        grid_spec=pltpu.PrefetchScalarGridSpec(
            num_scalar_prefetch=0,
            grid=(N,),
            in_specs=[
                pl.BlockSpec((1, M, Lq, S), lambda n: (n, 0, 0, 0)),
                pl.BlockSpec((1, M, S, D), lambda n: (n, 0, 0, 0)),
            ],
            out_specs=pl.BlockSpec((1, Lq, M * D), lambda n: (n, 0, 0)),
        ),
        compiler_params=pltpu.CompilerParams(dimension_semantics=("parallel",)),
    )(A, V)


# ----------------------------------------------------------------------------
# JAX glue
# ----------------------------------------------------------------------------

def unfold3x3(x, stride):
    """torch.nn.Unfold(kernel_size=3, padding=1, stride=stride) on NCHW input.

    x: (B, C, H, W) -> (B, C*9, Ho*Wo) with channel ordering (c, kh, kw)."""
    B, C, H, W = x.shape
    xp = jnp.pad(x, ((0, 0), (0, 0), (1, 1), (1, 1)))
    Ho = (H + 2 - 3) // stride + 1
    Wo = (W + 2 - 3) // stride + 1
    cols = []
    for kh in range(3):
        for kw in range(3):
            sl = jax.lax.slice(
                xp, (0, 0, kh, kw),
                (B, C, kh + (Ho - 1) * stride + 1, kw + (Wo - 1) * stride + 1),
                (1, 1, stride, stride))
            cols.append(sl)                       # (B, C, Ho, Wo)
    p = jnp.stack(cols, axis=2)                   # (B, C, 9, Ho, Wo)
    return p.reshape(B, C * 9, Ho * Wo)


def init_params(key, d_model, n_heads, n_levels, n_points):
    d_attn = n_heads * n_levels * n_points * 9
    bound = math.sqrt(6.0 / (d_model + d_model))  # xavier_uniform_
    w_out = jax.random.uniform(key, (d_model, d_model), jnp.float32, -bound, bound)
    return dict(
        w_out=jnp.transpose(w_out),                          # stored as (d_in, d_out)
        b_out=jnp.zeros((1, d_model), jnp.float32),          # constant_(0)
        w_attn=jnp.zeros((d_model, d_attn), jnp.float32),    # constant_(0)
        b_attn=jnp.zeros((1, d_attn), jnp.float32),          # constant_(0)
    )


def ms_deform_match_v4_attn(query, reference_points, input_flatten,
                            spatial_shapes, level_start_index, params,
                            n_heads, n_levels, n_points):
    N, Len_q, d_model = query.shape
    _, Len_in, dim = input_flatten.shape
    h = w = int(spatial_shapes[0, 0])             # module sets h = w = shapes[0,0]
    t = Len_in // (h * w)
    assert int(np.sum(spatial_shapes[:, 0] * spatial_shapes[:, 1])) == Len_in
    M, L, P = n_heads, n_levels, n_points
    d_head = d_model // M
    P9 = P * 9
    assert t == M * L, "module's view() requires t == n_heads * n_levels"

    value = input_flatten.reshape(N, Len_in, M, d_head)

    # ---- unfold (im2col) on NCHW, exactly like torch.nn.Unfold ----
    query_p = jnp.transpose(query.reshape(N, t, h, w, dim),
                            (0, 1, 4, 2, 3)).reshape(N * t, dim, h, w)
    q_patch = unfold3x3(query_p, 1)                           # (N*t, dim*9, h*w)
    q_patch = jnp.transpose(q_patch.reshape(N, t, dim * 9, h * w),
                            (0, 1, 3, 2)).reshape(N, t * h * w, dim * 9)

    input_p = jnp.transpose(input_flatten.reshape(N, t, h, w, dim),
                            (0, 1, 4, 2, 3)).reshape(N * t, dim, h, w)
    v_patch = unfold3x3(input_p, 2)                           # (N*t, dim*9, hw/4)
    hw4 = v_patch.shape[-1]
    # columns ordered as frame*hw4 + spatial  (matches torch's view/transpose/flatten)
    vt = jnp.transpose(v_patch.reshape(N, t, dim * 9, hw4),
                       (0, 2, 1, 3)).reshape(N, dim * 9, t * hw4)

    # pad the contraction dim to a multiple of 128, cast MXU operands to bf16
    K9 = dim * 9
    K9p = ((K9 + 127) // 128) * 128
    if K9p != K9:
        q_patch = jnp.pad(q_patch, ((0, 0), (0, 0), (0, K9p - K9)))
        vt = jnp.pad(vt, ((0, 0), (0, K9p - K9), (0, 0)))
    q_bf = q_patch.astype(jnp.bfloat16)
    vt_bf = vt.astype(jnp.bfloat16)

    # ---- correlation + per-frame softmax(10 * corr / dim) in Pallas ----
    prob = correlation_softmax(q_bf, vt_bf, scale=10.0 / dim, t=t, hw4=hw4)
    prob = prob.reshape(N, Len_q, t, hw4)                     # free reshape, no copy

    # TODO(synk): top_k and the neighbor-index arithmetic have no clean Pallas
    # primitive; they stay in plain JAX glue (exactly the torch module's math).
    _, indices = jax.lax.top_k(prob, P)                       # (N, Lq, t, P)
    indices = indices * 2
    neigh = [-1 - h, -h, 1 - h, -1, 0, 1, -1 + h, h, 1 + h]
    resample = jnp.concatenate([indices + o for o in neigh], axis=-1)  # (N,Lq,t,P9)
    max_grid = (h - 1) * (w - 1)
    resample = jnp.clip(resample, 0, max_grid)
    idx_f = resample.astype(jnp.float32)[..., None]           # (N, Lq, t, P9, 1)
    offsets_w = jnp.floor(idx_f / h)
    offsets_h = idx_f - offsets_w * h
    offsets = jnp.concatenate([offsets_w, offsets_h], axis=-1)  # (N,Lq,t,P9,2)
    sampling_offsets = offsets.reshape(N, Len_q, M, L, P9, 2)

    # ---- attention_weights linear (Pallas) + softmax ----
    aw = linear(query.reshape(N * Len_q, d_model), params["w_attn"], params["b_attn"])
    aw = aw.reshape(N, Len_q, M, L * P9)
    aw = jax.nn.softmax(aw, axis=-1).reshape(N, Len_q, M, L, P9)

    # ---- sampling locations (reference_points.shape[-1] == 2 branch) ----
    assert reference_points.shape[-1] == 2
    ss = jnp.asarray(spatial_shapes, jnp.float32)             # (L, 2) = [H, W]
    offset_normalizer = jnp.stack([ss[:, 1], ss[:, 0]], axis=-1)  # (L, 2) = [W, H]
    sampling_locations = sampling_offsets / offset_normalizer[None, None, None, :, None, :]

    # ---- build sparse sampling matrix A (levels x 4 corners, one scatter-add) ----
    # grid_sample align_corners=False convention: pixel = loc * size - 0.5
    H_b = ss[:, 0][None, None, None, :, None]                 # (1,1,1,L,1)
    W_b = ss[:, 1][None, None, None, :, None]
    lsi = jnp.asarray(level_start_index, jnp.int32)[None, None, None, :, None, None]
    x = sampling_locations[..., 0]                            # (N, Lq, M, L, P9)
    y = sampling_locations[..., 1]
    h_im = y * H_b - 0.5
    w_im = x * W_b - 0.5
    h0 = jnp.floor(h_im)
    w0 = jnp.floor(w_im)
    lh = h_im - h0
    lw = w_im - w0
    corner_w = jnp.stack([(1.0 - lh) * (1.0 - lw), (1.0 - lh) * lw,
                          lh * (1.0 - lw), lh * lw], axis=-1)  # (N,Lq,M,L,P9,4)
    dh = jnp.asarray([0.0, 0.0, 1.0, 1.0], jnp.float32)
    dw = jnp.asarray([0.0, 1.0, 0.0, 1.0], jnp.float32)
    hc = h0[..., None] + dh
    wc = w0[..., None] + dw
    H_b4 = H_b[..., None]
    W_b4 = W_b[..., None]
    valid = (hc >= 0) & (hc <= H_b4 - 1) & (wc >= 0) & (wc <= W_b4 - 1)
    hci = jnp.clip(hc, 0, H_b4 - 1).astype(jnp.int32)
    wci = jnp.clip(wc, 0, W_b4 - 1).astype(jnp.int32)
    flat = hci * W_b4.astype(jnp.int32) + wci + lsi           # (N,Lq,M,L,P9,4), into Len_in
    wgt = jnp.where(valid, corner_w * aw[..., None], 0.0)     # (N,Lq,M,L,P9,4)

    # TODO(synk): a fully scatter-free build (flat indices + weights fed to the
    # deform kernel via scalar prefetch / in-kernel gather) has no clean Pallas
    # TPU primitive; a single batched scatter-add in JAX is used instead.
    A = jnp.zeros((N, M, Len_q, Len_in), jnp.float32)
    n_idx = jnp.arange(N)[:, None, None, None, None, None]
    q_idx = jnp.arange(Len_q)[None, :, None, None, None, None]
    m_idx = jnp.arange(M)[None, None, :, None, None, None]
    A = A.at[n_idx, m_idx, q_idx, flat].add(wgt)

    V = jnp.transpose(value, (0, 2, 1, 3))                    # (N, M, Len_in, d_head)

    # ---- MSDeformAttn core as batched, level-folded matmul in Pallas ----
    out = deform_aggregate(A.astype(jnp.bfloat16), V.astype(jnp.bfloat16))
    # out already (N, Lq, M*d_head) head-major -> matches d_model layout

    # ---- output projection (Pallas) ----
    output = linear(out.reshape(N * Len_q, d_model), params["w_out"], params["b_out"])
    output = output.reshape(N, Len_q, d_model)
    return output, sampling_locations


# ----------------------------------------------------------------------------
# main
# ----------------------------------------------------------------------------

if __name__ == "__main__":
    d_model, n_heads, n_levels, n_points = 32, 2, 2, 2
    h = w = 8
    t = n_heads * n_levels                                   # required by the module's view()
    N = 2
    # level 0 is (h, w); remaining levels are sized so sum(H*W) == t*h*w
    spatial_shapes = np.array([[8, 8], [16, 12]], dtype=np.int32)
    level_start_index = np.array([0, 64], dtype=np.int32)
    Len_in = int(np.sum(spatial_shapes[:, 0] * spatial_shapes[:, 1]))
    Len_q = t * h * w
    assert Len_in == Len_q == 256

    key = jax.random.PRNGKey(0)
    k1, k2, k3, k4 = jax.random.split(key, 4)
    query = jax.random.normal(k1, (N, Len_q, d_model), jnp.float32)
    input_flatten = jax.random.normal(k2, (N, Len_in, d_model), jnp.float32)
    reference_points = jax.random.uniform(k3, (N, Len_q, n_levels, 2), jnp.float32)
    params = init_params(k4, d_model, n_heads, n_levels, n_points)

    output, sampling_locations = ms_deform_match_v4_attn(
        query, reference_points, input_flatten, spatial_shapes,
        level_start_index, params, n_heads, n_levels, n_points)
    jax.block_until_ready((output, sampling_locations))
    assert output.shape == (N, Len_q, d_model)
    assert sampling_locations.shape == (N, Len_q, n_heads, n_levels, n_points * 9, 2)
    assert bool(jnp.all(jnp.isfinite(output)))
    print("KERNEL_OK")
</pallas_src>

<mosaic_0001>
module attributes {stable_mosaic.version = 11 : i64} {
  func.func @_corr_kernel(%arg0: i32, %arg1: i32, %arg2: memref<1x128x384xbf16, #tpu.memory_space<vmem>>, %arg3: memref<1x384x64xbf16, #tpu.memory_space<vmem>>, %arg4: memref<1x128x64xf32, #tpu.memory_space<vmem>>) attributes {dimension_semantics = [#tpu.dimension_semantics<parallel>, #tpu.dimension_semantics<parallel>], iteration_bounds = array<i64: 2, 2>, scalar_prefetch = 0 : i64, scratch_operands = 0 : i64, tpu.core_type = #tpu.core_type<tc>, window_params = [{transform_indices = @transform_0, window_bounds = array<i64: 1, 128, 384>}, {transform_indices = @transform_1, window_bounds = array<i64: 1, 384, 64>}, {transform_indices = @transform_2, window_bounds = array<i64: 1, 128, 64>}]} {
    %c0 = arith.constant 0 : index
    %c0_0 = arith.constant 0 : index
    %c0_1 = arith.constant 0 : index
    %0 = vector.load %arg2[%c0, %c0_0, %c0_1] : memref<1x128x384xbf16, #tpu.memory_space<vmem>>, vector<1x128x384xbf16>
    %1 = vector.shape_cast %0 : vector<1x128x384xbf16> to vector<128x384xbf16>
    %c0_2 = arith.constant 0 : index
    %c0_3 = arith.constant 0 : index
    %c0_4 = arith.constant 0 : index
    %2 = vector.load %arg3[%c0_2, %c0_3, %c0_4] : memref<1x384x64xbf16, #tpu.memory_space<vmem>>, vector<1x384x64xbf16>
    %3 = vector.shape_cast %2 : vector<1x384x64xbf16> to vector<384x64xbf16>
    %cst = arith.constant dense<0.000000e+00> : vector<128x64xf32>
    %4 = tpu.matmul %1, %3, %cst {dimension_numbers = #tpu.dot_dimension_numbers<[1], [0], [0], [1], [0, 0, 1, 1], [], []>} : vector<128x384xbf16>, vector<384x64xbf16>, vector<128x64xf32> -> vector<128x64xf32>
    %cst_5 = arith.constant 3.125000e-01 : f32
    %5 = vector.broadcast %cst_5 : f32 to vector<128x64xf32>
    %6 = arith.mulf %4, %5 : vector<128x64xf32>
    %7 = vector.extract_strided_slice %6 {offsets = [0, 0], sizes = [128, 16], strides = [1, 1]} : vector<128x64xf32> to vector<128x16xf32>
    %cst_6 = arith.constant dense<0xFF800000> : vector<128xf32>
    %8 = vector.multi_reduction <maximumf>, %7, %cst_6 [1] : vector<128x16xf32> to vector<128xf32>
    %9 = vector.shape_cast %8 : vector<128xf32> to vector<128x1xf32>
    %10 = vector.broadcast %9 : vector<128x1xf32> to vector<128x16xf32>
    %11 = arith.subf %7, %10 : vector<128x16xf32>
    %12 = math.exp %11 : vector<128x16xf32>
    %cst_7 = arith.constant dense<0.000000e+00> : vector<128xf32>
    %13 = vector.multi_reduction <add>, %12, %cst_7 [1] : vector<128x16xf32> to vector<128xf32>
    %14 = vector.shape_cast %13 : vector<128xf32> to vector<128x1xf32>
    %15 = tpu.reciprocal %14 {approx = true} : vector<128x1xf32> -> vector<128x1xf32>
    %16 = vector.broadcast %15 : vector<128x1xf32> to vector<128x16xf32>
    %17 = arith.mulf %12, %16 : vector<128x16xf32>
    %18 = vector.extract_strided_slice %6 {offsets = [0, 16], sizes = [128, 16], strides = [1, 1]} : vector<128x64xf32> to vector<128x16xf32>
    %cst_8 = arith.constant dense<0xFF800000> : vector<128xf32>
    %19 = vector.multi_reduction <maximumf>, %18, %cst_8 [1] : vector<128x16xf32> to vector<128xf32>
    %20 = vector.shape_cast %19 : vector<128xf32> to vector<128x1xf32>
    %21 = vector.broadcast %20 : vector<128x1xf32> to vector<128x16xf32>
    %22 = arith.subf %18, %21 : vector<128x16xf32>
    %23 = math.exp %22 : vector<128x16xf32>
    %cst_9 = arith.constant dense<0.000000e+00> : vector<128xf32>
    %24 = vector.multi_reduction <add>, %23, %cst_9 [1] : vector<128x16xf32> to vector<128xf32>
    %25 = vector.shape_cast %24 : vector<128xf32> to vector<128x1xf32>
    %26 = tpu.reciprocal %25 {approx = true} : vector<128x1xf32> -> vector<128x1xf32>
    %27 = vector.broadcast %26 : vector<128x1xf32> to vector<128x16xf32>
    %28 = arith.mulf %23, %27 : vector<128x16xf32>
    %29 = vector.extract_strided_slice %6 {offsets = [0, 32], sizes = [128, 16], strides = [1, 1]} : vector<128x64xf32> to vector<128x16xf32>
    %cst_10 = arith.constant dense<0xFF800000> : vector<128xf32>
    %30 = vector.multi_reduction <maximumf>, %29, %cst_10 [1] : vector<128x16xf32> to vector<128xf32>
    %31 = vector.shape_cast %30 : vector<128xf32> to vector<128x1xf32>
    %32 = vector.broadcast %31 : vector<128x1xf32> to vector<128x16xf32>
    %33 = arith.subf %29, %32 : vector<128x16xf32>
    %34 = math.exp %33 : vector<128x16xf32>
    %cst_11 = arith.constant dense<0.000000e+00> : vector<128xf32>
    %35 = vector.multi_reduction <add>, %34, %cst_11 [1] : vector<128x16xf32> to vector<128xf32>
    %36 = vector.shape_cast %35 : vector<128xf32> to vector<128x1xf32>
    %37 = tpu.reciprocal %36 {approx = true} : vector<128x1xf32> -> vector<128x1xf32>
    %38 = vector.broadcast %37 : vector<128x1xf32> to vector<128x16xf32>
    %39 = arith.mulf %34, %38 : vector<128x16xf32>
    %40 = vector.extract_strided_slice %6 {offsets = [0, 48], sizes = [128, 16], strides = [1, 1]} : vector<128x64xf32> to vector<128x16xf32>
    %cst_12 = arith.constant dense<0xFF800000> : vector<128xf32>
    %41 = vector.multi_reduction <maximumf>, %40, %cst_12 [1] : vector<128x16xf32> to vector<128xf32>
    %42 = vector.shape_cast %41 : vector<128xf32> to vector<128x1xf32>
    %43 = vector.broadcast %42 : vector<128x1xf32> to vector<128x16xf32>
    %44 = arith.subf %40, %43 : vector<128x16xf32>
    %45 = math.exp %44 : vector<128x16xf32>
    %cst_13 = arith.constant dense<0.000000e+00> : vector<128xf32>
    %46 = vector.multi_reduction <add>, %45, %cst_13 [1] : vector<128x16xf32> to vector<128xf32>
    %47 = vector.shape_cast %46 : vector<128xf32> to vector<128x1xf32>
    %48 = tpu.reciprocal %47 {approx = true} : vector<128x1xf32> -> vector<128x1xf32>
    %49 = vector.broadcast %48 : vector<128x1xf32> to vector<128x16xf32>
    %50 = arith.mulf %45, %49 : vector<128x16xf32>
    %51 = tpu.concatenate %17, %28, %39, %50 in 1 : vector<128x16xf32>, vector<128x16xf32>, vector<128x16xf32>, vector<128x16xf32> -> vector<128x64xf32>
    %c0_14 = arith.constant 0 : index
    %c0_15 = arith.constant 0 : index
    %c0_16 = arith.constant 0 : index
    %52 = vector.load %arg4[%c0_14, %c0_15, %c0_16] : memref<1x128x64xf32, #tpu.memory_space<vmem>>, vector<1x128x64xf32>
    %53 = vector.shape_cast %52 : vector<1x128x64xf32> to vector<128x64xf32>
    %54 = vector.shape_cast %51 : vector<128x64xf32> to vector<1x128x64xf32>
    tpu.vector_store %arg4[%c0_14, %c0_15, %c0_16], %54 {strides = array<i32>} : memref<1x128x64xf32, #tpu.memory_space<vmem>>, vector<1x128x64xf32>,
    return
  }
  func.func @transform_0(%arg0: i32, %arg1: i32) -> (i32, i32, i32) {
    %c0_i32 = arith.constant 0 : i32
    %c0_i32_0 = arith.constant 0 : i32
    return %arg0, %arg1, %c0_i32 : i32, i32, i32
  }
  func.func @transform_1(%arg0: i32, %arg1: i32) -> (i32, i32, i32) {
    %c0_i32 = arith.constant 0 : i32
    %c0_i32_0 = arith.constant 0 : i32
    %c0_i32_1 = arith.constant 0 : i32
    return %arg0, %c0_i32, %c0_i32_0 : i32, i32, i32
  }
  func.func @transform_2(%arg0: i32, %arg1: i32) -> (i32, i32, i32) {
    %c0_i32 = arith.constant 0 : i32
    %c0_i32_0 = arith.constant 0 : i32
    return %arg0, %arg1, %c0_i32 : i32, i32, i32
  }
}

</mosaic_0001>

<bundles_post_ra>
// kernel: tpu_custom_call.1
= control target key start
LH: loop header
LB: loop body
LE: loop exit
PB: predicated region body
PF: predicated region fallthrough
CT: control target
= control target key end

     0   :  { %7 = vsyncpa [#allocation3], 0  ;;  %s3446_s0 = inlined_call_operand.hbm [shape: bf16[2,256,384], index: 0, kind: input, shape index: {}]   ;;  %s3447_s1 = inlined_call_operand.vmem [shape: bf16[2,384,64], index: 1, kind: input, shape index: {}]   ;;  %s3448_s2 = inlined_call_operand.vmem [shape: f32[2,256,64], index: 2, kind: output, shape index: {}]  }
   0x1   :  { %9 = vsyncpa [#allocation3 + $0x1], 0  ;;  %s2537_s9 = smov 0   ;;  %s2539_s10 = smov 0  }
   0x2   :  { %s2541_s11 = smov 0   ;;  %s2543_s12 = smov 0  }
   0x3   :  { %s2545_s13 = smov 0   ;;  %s2547_s14 = smov 0  }
   0x4   :  { %s2549_s15 = smov 0   ;;  %s2551_s16 = smov 0  }
   0x5 LB: > { %s1853_s17 = sadd.s32 4294967295, %s2514_s16   ;;  %s24_s18 = sadd.s32 1, %s2506_s14  ;;  %s2514_s16 = sphi %s2551_s16, %s15_s16   ;;  %s2510_s15 = sphi %s2549_s15, %s3562_s15   ;;  %s2506_s14 = sphi %s2547_s14, %s3561_s14   ;;  %s2502_s13 = sphi %s2545_s13, %s3560_s13   ;;  %s2498_s12 = sphi %s2543_s12, %s3559_s12   ;;  %s2494_s11 = sphi %s2541_s11, %s3558_s11   ;;  %s2490_s10 = sphi %s2539_s10, %s3557_s10   ;;  %s2486_s9 = sphi %s2537_s9, %s3556_s9  }
   0x6   : > { %p25_p0 = scmp.ge.s32.totalorder %s24_s18, 2  ;;  %s27_s19 = sadd.s32 1, %s2510_s15 }
   0x7   : > { %s36_s20 = sadd.s32 1, %s2494_s11  ;;  %p43_p1 = scmp.ne.s32.totalorder %s2494_s11, %s2490_s10 }
   0x8   : > { %s3564_s18 = smov (%p25_p0, %s24_s18), 0  ;;  %s3566_s19 = smov (!%p25_p0, %s27_s19), %s2510_s15 }
   0x9   : > { %s32_s21 = ssub.s32 %s2506_s14, %s3564_s18  ;;  %p44_p2 = scmp.eq.s32.totalorder %s2514_s16, 0 }
   0xa   : > { %p29_p3 = scmp.ge.s32.totalorder %s3566_s19, 2  ;;  %p49_p4 = scmp.ne.s32.totalorder %s2490_s10, %s2486_s9 }
   0xb   : > { %p45_p5 = por %p44_p2, %p43_p1  ;;  %p50_p6 = scmp.eq.s32.totalorder %s1853_s17, 0 }
   0xc   : > { %s3568_s19 = smov (%p29_p3, %s3566_s19), 0  ;;  %p2038_p8 = scmp.lt.s32.totalorder %s2514_s16, 4 }
   0xd   : > { %p2590_p7 = por %p50_p6, %p49_p4  ;;  %s31_s23 = ssub.s32 %s2510_s15, %s3568_s19 }
   0xe   : > { %s33_s24 = sor.u32 %s32_s21, %s31_s23  ;;  %s127_s25 = sand.u32 1, %s2494_s11  }
   0xf   : > { %p34_p9 = scmp.eq.s32.totalorder %s33_s24, 0  ;;  %s2027_s26 = smul.u32 192, %s127_s25 }
  0x10   : > { %p2598_p10 = pnand %p2038_p8, %p45_p5  ;;  %s2028_s29 = smul.u32 48, %s2506_s14 }
  0x11   : > { %s2603_s28 = scalar_select %p34_p9, %s2494_s11, %s36_s20  }
  0x12   : > { %s2029_s30 = smul.u32 96, %s2510_s15  ;;  %s131_s3 = scalar_lea.vmem [#allocation2], %s2027_s26 }
  0x13   : > { %s141_s4 = sshll.u32 %s131_s3, 4  ;;  %p1860_p11 = scmp.ge.s32.totalorder %s2514_s16, 1  ;;  %s142_s4 = int_to_ptr.vmem [resolvable:$true] %s141_s4 }
  0x14   : > { %s138_s5 = sadd.s32 %s2029_s30, %s2028_s29  ;;  %s128_s17 = scalar_lea.sflag [#allocation3], %s127_s25 }
  0x15   : > { %s1859_s6 = sshll.u32 %s138_s5, 6  ;;  %p2422_p12 = pneg %p2598_p10 }
  0x16   : > { %s140_s9 = scalar_lea.hbm %s3446_s0, %s1859_s6  ;;  %s2433_s21 = scalar_lea.vmem %s142_s4, 3072 }
  0x17   : > { %p2434_p13 = scmp.ne.s32.totalorder %s142_s4, %s2433_s21  ;;  %s2516_s20 = smov [#allocation2]  }
  0x18   : > { %s2438_s23 = sshll.u32 %s2516_s20, 4  ;;  %s2439_s23 = int_to_ptr.vmem [resolvable:$false] %s2438_s23 }
  0x19   : > { %p2436_p0 = pnand %p2434_p13, %p2422_p12  ;;  %s2440_s24 = scalar_lea.vmem %s2439_s23, 6144 }
  0x1a   : > { %p2441_p2 = scmp.lt.s32.totalorder %s142_s4, %s2439_s23  ;;  %p2442_p3 = scmp.lt.s32.totalorder %s2440_s24, %s2433_s21 }
  0x1b   : > { %p2437_p1 = pneg %p2436_p0 }
  0x1c   : > { %p2443_p4 = por %p2442_p3, %p2441_p2 }
  0x1e   : > { %p2444_p5 = pnand %p2443_p4, %p2437_p1 }
  0x20   : > { %2447 = shalt.err (!%p2444_p5)
}
  0x21   : > { %s2517_s26 = smov 192   ;;  %s2518_s25 = smov 12  }
  0x22   : > { %2037 = dma.hbm_to_vmem [thread:$0]  (!%p2598_p10), %s140_s9, 3072, %s142_s4, %s128_s17, %s2517_s26, %s2517_s26, %s2518_s25  }
  0x23   : > { %p157_p6 = scmp.lt.s32.totalorder %s2514_s16, 5 }
  0x25   : > { %p158_p8 = pnand %p1860_p11, %p157_p6 }
  0x27   : > { %161 = sbr.rel (%p158_p8) target bundleno = 1176 (0x498), region = 28 }
  0x2c   : > { %s163_s29 = sand.u32 1, %s2490_s10  }
  0x2d   : > { %s2030_s30 = smul.u32 192, %s163_s29  ;;  %s164_s3 = scalar_lea.sflag [#allocation3], %s163_s29 }
  0x2f   : > { %s2619_s5 = scalar_lea.vmem [#allocation2], %s2030_s30 }
  0x30   : > { %2481 = dma.done.wait (%p2590_p7), %s164_s3, 3072  }
  0x31   : > { %2483 = vsyncadd (%p2590_p7), %s164_s3, 4294964224  ;;  %p198_p9 = scmp.lt.s32.totalorder %s2502_s13, 1  ;;  %v2134_v23 = vld [vmem:[%s2619_s5 + $0x4] ss:$12 sps:$4 sm:$0xff]   ;;  %v2135_v24 = vld [vmem:[%s2619_s5 + $0x8] ss:$12 sps:$4 sm:$0xff]  }
  0x32   : > { %598 = vmatprep.mubr.bf16.mxu0 %v2134_v23  ;;  %v2132_v26 = vld [vmem:[%s2619_s5] ss:$12 sps:$4 sm:$0xff]   ;;  %2011 = vmatprep.mubr.bf16.mxu1 %v2135_v24  ;;  %v2137_v28 = vld [vmem:[%s2619_s5 + $0x1c] ss:$12 sps:$4 sm:$0xff]   ;;  %v2143_v29 = vld [vmem:[%s2619_s5 + $0x38] ss:$12 sps:$4 sm:$0xff]  }
  0x33   : > { %s3570_s13 = smov (!%p198_p9, %s2502_s13), 1  ;;  %v2136_v27 = vld [vmem:[%s2619_s5 + $0x20] ss:$12 sps:$4 sm:$0xff]   ;;  %v2139_v30 = vld [vmem:[%s2619_s5 + $0x18] ss:$12 sps:$4 sm:$0xff]   ;;  %vm776_vm0 = vcmask 130048  }
  0x34   : > { %s2031_s27 = smul.u32 192, %s3570_s13  ;;  %v2140_v31 = vld [vmem:[%s2619_s5 + $0x34] ss:$12 sps:$4 sm:$0xff]   ;;  %v2144_v32 = vld [vmem:[%s2619_s5 + $0x50] ss:$12 sps:$4 sm:$0xff]   ;;  %vm953_vm1 = vcmask 261248  }
  0x35   : > { %v2151_v33 = vld [vmem:[%s2619_s5 + $0x68] ss:$12 sps:$4 sm:$0xff]   ;;  %v2142_v34 = vld [vmem:[%s2619_s5 + $0x30] ss:$12 sps:$4 sm:$0xff]   ;;  %v2152_v35 = vld [vmem:[%s2619_s5 + $0x80] ss:$12 sps:$4 sm:$0xff]  }
  0x36   : > { %s2633_s7 = scalar_lea.vmem %s3447_s1, %s2031_s27  ;;  %v2145_v36 = vld [vmem:[%s2619_s5 + $0x4c] ss:$12 sps:$4 sm:$0xff]   ;;  %v2147_v38 = vld [vmem:[%s2619_s5 + $0x48] ss:$12 sps:$4 sm:$0xff]   ;;  %v2160_v39 = vld [vmem:[%s2619_s5 + $0xb0] ss:$12 sps:$4 sm:$0xff]  }
  0x37   : > { %v2108_v0 = vld [vmem:[%s2633_s7 + $0x78] sm:$0xff]   ;;  %v2111_v3 = vld [vmem:[%s2633_s7 + $0x70] sm:$0xff]   ;;  %v2114_v6 = vld [vmem:[%s2633_s7 + $0x68] sm:$0xff]   ;;  %vm1194_vm2 = vcmask 392448   ;;  %vm1435_vm3 = vcmask 523648   ;;  %s2519_s22 = smov 112  }
  0x38   : > { %v2109_v1 = vld [vmem:[%s2633_s7 + $0xb8] sm:$0xff]   ;;  %1915 = vmatprep.subr.bf16.mxu0 %v2108_v0  ;;  %v2112_v4 = vld [vmem:[%s2633_s7 + $0xb0] sm:$0xff]   ;;  %v2115_v7 = vld [vmem:[%s2633_s7 + $0xa8] sm:$0xff]   ;;  %s2520_s8 = smov 96   ;;  %s2521_s9 = smov 80   ;;  %vm1692_vm4 = vcmask 261120  }
  0x39   : > { %v2110_v2 = vld [vmem:[%s2633_s7 + $0x38] sm:$0xff]   ;;  %1995 = vmatprep.subr.bf16.mxu1 %v2109_v1  ;;  %v2113_v5 = vld [vmem:[%s2633_s7 + $0x30] sm:$0xff]   ;;  %v2116_v8 = vld [vmem:[%s2633_s7 + $0x28] sm:$0xff]   ;;  %s1862_s17 = sshll.u32 %s2498_s12, 4  ;;  %s1863_s21 = sshll.u32 %s3570_s13, 5  ;;  %vm1709_vm5 = vcmask 392192  }
  0x3a   : > { %1916 = vmatpush3.bf16.msra.mxu0 %v2110_v2  ;;  %1996 = vmatpush3.bf16.msra.mxu1 %v2109_v1  ;;  %v2117_v9 = vld [vmem:[%s2633_s7 + $0x60] sm:$0xff]   ;;  %v2120_v12 = vld [vmem:[%s2633_s7 + $0x58] sm:$0xff]   ;;  %v2123_v15 = vld [vmem:[%s2633_s7 + $0x50] sm:$0xff]   ;;  %p206_p7 = scmp.lt.s32.totalorder %s1862_s17, 31  ;;  %vm1726_vm6 = vcmask 523264  }
  0x3b   : > { %1917 = vmatprep.subr.bf16.mxu0 %v2111_v3  ;;  %1997 = vmatprep.subr.bf16.mxu1 %v2112_v4  ;;  %v2118_v10 = vld [vmem:[%s2633_s7 + $0xa0] sm:$0xff]   ;;  %v2121_v13 = vld [vmem:[%s2633_s7 + $0x98] sm:$0xff]   ;;  %v2124_v16 = vld [vmem:[%s2633_s7 + $0x90] sm:$0xff]  }
  0x3c   : > { %v2119_v11 = vld [vmem:[%s2633_s7 + $0x20] sm:$0xff]   ;;  %v2122_v14 = vld [vmem:[%s2633_s7 + $0x18] sm:$0xff]   ;;  %v2125_v17 = vld [vmem:[%s2633_s7 + $0x10] sm:$0xff]   ;;  %s3572_s17 = smov (!%p206_p7, %s1862_s17), 31 }
  0x3d   : > { %v2126_v18 = vld [vmem:[%s2633_s7 + $0x48] sm:$0xff]   ;;  %v2129_v21 = vld [vmem:[%s2633_s7 + $0x40] sm:$0xff]   ;;  %v2158_v45 = vld [vmem:[%s2619_s5 + $0x90] ss:$12 sps:$4 sm:$0xff]   ;;  %s209_s20 = sadd.s32 %s1863_s21, %s3572_s17 }
  0x3e   : > { %1918 = vmatpush3.bf16.msra.mxu0 %v2113_v5  ;;  %1998 = vmatpush3.bf16.msra.mxu1 %v2112_v4  ;;  %v2127_v19 = vld [vmem:[%s2633_s7 + $0x88] sm:$0xff]   ;;  %v2130_v22 = vld [vmem:[%s2633_s7 + $0x80] sm:$0xff]   ;;  %s1864_s12 = sshll.u32 %s209_s20, 3 }
  0x3f   : > { %1919 = vmatprep.subr.bf16.mxu0 %v2114_v6  ;;  %1999 = vmatprep.subr.bf16.mxu1 %v2115_v7  ;;  %v2128_v20 = vld [vmem:[%s2633_s7 + $0x8] sm:$0xff]   ;;  %v2131_v25 = vld [vmem:[%s2633_s7] sm:$0xff]   ;;  %s3266_s24 = scalar_lea.vmem %s3448_s2, %s1864_s12 }
  0x40   : > { %v2159_v37 = vld [vmem:[%s2619_s5 + $0x98] ss:$12 sps:$4 sm:$0xff]   ;;  %v2150_v41 = vld [vmem:[%s2619_s5 + $0x60] ss:$12 sps:$4 sm:$0xff]   ;;  %v2153_v42 = vld [vmem:[%s2619_s5 + $0x7c] ss:$12 sps:$4 sm:$0xff]  }
  0x41   : > { %v2148_v40 = vld [vmem:[%s2619_s5 + $0x64] ss:$12 sps:$4 sm:$0xff]   ;;  %v2156_v44 = vld [vmem:[%s2619_s5 + $0x94] ss:$12 sps:$4 sm:$0xff]   ;;  %v2161_v46 = vld [vmem:[%s2619_s5 + $0xac] ss:$12 sps:$4 sm:$0xff]  }
  0x42   : > { %1920 = vmatpush3.bf16.msra.mxu0 %v2116_v8  ;;  %2000 = vmatpush3.bf16.msra.mxu1 %v2115_v7  ;;  %v2155_v43 = vld [vmem:[%s2619_s5 + $0x78] ss:$12 sps:$4 sm:$0xff]   ;;  %v2163_v47 = vld [vmem:[%s2619_s5 + $0xa8] ss:$12 sps:$4 sm:$0xff]  }
  0x43   : > { %1921 = vmatprep.subr.bf16.mxu0 %v2117_v9  ;;  %2001 = vmatprep.subr.bf16.mxu1 %v2118_v10 }
  0x46   : > { %1922 = vmatpush3.bf16.msra.mxu0 %v2119_v11  ;;  %2002 = vmatpush3.bf16.msra.mxu1 %v2118_v10 }
  0x47   : > { %1923 = vmatprep.subr.bf16.mxu0 %v2120_v12  ;;  %2003 = vmatprep.subr.bf16.mxu1 %v2121_v13 }
  0x4a   : > { %1924 = vmatpush3.bf16.msra.mxu0 %v2122_v14  ;;  %2004 = vmatpush3.bf16.msra.mxu1 %v2121_v13 }
  0x4b   : > { %1925 = vmatprep.subr.bf16.mxu0 %v2123_v15  ;;  %2005 = vmatprep.subr.bf16.mxu1 %v2124_v16 }
  0x4e   : > { %1926 = vmatpush3.bf16.msra.mxu0 %v2125_v17  ;;  %2006 = vmatpush3.bf16.msra.mxu1 %v2124_v16 }
  0x4f   : > { %1927 = vmatprep.subr.bf16.mxu0 %v2126_v18  ;;  %2007 = vmatprep.subr.bf16.mxu1 %v2127_v19 }
  0x52   : > { %1928 = vmatpush3.bf16.msra.mxu0 %v2128_v20  ;;  %2008 = vmatpush3.bf16.msra.mxu1 %v2127_v19 }
  0x53   : > { %1929 = vmatprep.subr.bf16.mxu0 %v2129_v21  ;;  %2009 = vmatprep.subr.bf16.mxu1 %v2130_v22 }
  0x56   : > { %1930 = vmatpush3.bf16.msra.mxu0 %v2131_v25  ;;  %2010 = vmatpush3.bf16.msra.mxu1 %v2130_v22 }
  0x59   : > { %599 = vmatmul.mubr.bf16.vlgmr.msra.gmra.mxu0 %v2132_v26  ;;  %2012 = vmatmul.mubr.bf16.vlgmr.msra.gmra.mxu1 %v2136_v27 }
  0x5a   : > { %606 = vmatprep.mubr.bf16.mxu0 %v2137_v28  ;;  %2015 = vmatprep.mubr.bf16.mxu1 %v2143_v29 }
  0x61   : > { %607 = vmatmul.mubr.bf16.gmra.mxu0 %v2139_v30  ;;  %2016 = vmatmul.mubr.bf16.gmra.mxu1 %v2144_v32 }
  0x62   : > { %614 = vmatprep.mubr.bf16.mxu0 %v2140_v31  ;;  %2019 = vmatprep.mubr.bf16.mxu1 %v2151_v33 }
  0x69   : > { %615 = vmatmul.mubr.bf16.gmra.mxu0 %v2142_v34  ;;  %2020 = vmatmul.mubr.bf16.gmra.mxu1 %v2152_v35 }
  0x6a   : > { %622 = vmatprep.mubr.bf16.mxu0 %v2145_v36  ;;  %2023 = vmatprep.mubr.bf16.mxu1 %v2159_v37 }
  0x71   : > { %623 = vmatmul.mubr.bf16.gmra.mxu0 %v2147_v38  ;;  %2024 = vmatmul.mubr.bf16.gmra.mxu1 %v2160_v39 }
  0x72   : > { %630 = vmatprep.mubr.bf16.mxu0 %v2148_v40 }
  0x79   : > { %631 = vmatmul.mubr.bf16.gmra.mxu0 %v2150_v41 }
  0x7a   : > { %638 = vmatprep.mubr.bf16.mxu0 %v2153_v42 }
  0x81   : > { %639 = vmatmul.mubr.bf16.gmra.mxu0 %v2155_v43 }
  0x82   : > { %646 = vmatprep.mubr.bf16.mxu0 %v2156_v44 }
  0x89   : > { %647 = vmatmul.mubr.bf16.gmra.mxu0 %v2158_v45 }
  0x8a   : > { %654 = vmatprep.mubr.bf16.mxu0 %v2161_v46 }
  0x91   : > { %655 = vmatmul.mubr.bf16.gmra.mxu0 %v2163_v47 }
 0x119   : > { %v1931_v48 = vpop.f32.mrf.mxu0  ;;  %v2013_v49 = vpop.f32.mrf.mxu1 }
 0x11b   : > { %v1932_v50 = vpop.f32.mrf.mxu0  ;;  %v697_v51 = vpop.f32.mrf.mxu1 }
 0x11c   : > { %v1933_v52 = vadd.f32 %v1932_v50, %v1931_v48 }
 0x11d   : > { %v1934_v53 = vpop.f32.mrf.mxu0  ;;  %v2014_v54 = vpop.f32.mrf.mxu1 }
 0x11e   : > { %v698_v55 = vadd.f32 %v1933_v52, %v697_v51 }
 0x11f   : > { %v1935_v56 = vpop.f32.mrf.mxu0  ;;  %v700_v59 = vpop.f32.mrf.mxu1 }
 0x120   : > { %v2683_v57 = vmul.f32 0.3125, %v698_v55  ;;  %v1936_v58 = vadd.f32 %v1935_v56, %v1934_v53 }
 0x121   : > { %v1937_v60 = vpop.f32.mrf.mxu0  ;;  %v2017_v12 = vpop.f32.mrf.mxu1 }
 0x122   : > { %v701_v61 = vadd.f32 %v1936_v58, %v700_v59  ;;  %v777_v62 = vsel %vm776_vm0, %v2683_v57, -inf  ;;  %v954_v4 = vsel %vm953_vm1, %v2683_v57, -inf  ;;  %v1195_v10 = vsel %vm1194_vm2, %v2683_v57, -inf }
 0x123   : > { %v1938_v63 = vpop.f32.mrf.mxu0  ;;  %778 = vmax.xlane.f32.xlu0 %v777_v62  ;;  %v1436_v16 = vsel %vm1435_vm3, %v2683_v57, -inf  ;;  %v713_v18 = vpop.f32.mrf.mxu1 }
 0x124   : > { %v2687_v0 = vmul.f32 0.3125, %v701_v61  ;;  %v1939_v2 = vadd.f32 %v1938_v63, %v1937_v60 }
 0x125   : > { %v1940_v1 = vpop.f32.mrf.mxu0  ;;  %v2018_v24 = vpop.f32.mrf.mxu1 }
 0x126   : > { %v957_v3 = vsel %vm953_vm1, %v2687_v0, -inf  ;;  %v706_v7 = vadd.f32 %v2013_v49, %v1939_v2  ;;  %v1198_v9 = vsel %vm1194_vm2, %v2687_v0, -inf  ;;  %v1439_v15 = vsel %vm1435_vm3, %v2687_v0, -inf }
 0x127   : > { %v1941_v5 = vpop.f32.mrf.mxu0  ;;  %958 = vmax.xlane.f32.xlu1 %v957_v3  ;;  %955 = vmax.xlane.f32.xlu0 %v954_v4  ;;  %v780_v21 = vsel %vm776_vm0, %v2687_v0, -inf  ;;  %v716_v29 = vpop.f32.mrf.mxu1 }
 0x128   : > { %v1942_v8 = vadd.f32 %v1941_v5, %v1940_v1  ;;  %v2697_v13 = vmul.f32 0.3125, %v706_v7 }
 0x129   : > { %v1943_v6 = vpop.f32.mrf.mxu0 }
 0x12a   : > { %v709_v14 = vadd.f32 %v2014_v54, %v1942_v8  ;;  %v783_v20 = vsel %vm776_vm0, %v2697_v13, -inf  ;;  %v960_v26 = vsel %vm953_vm1, %v2697_v13, -inf  ;;  %v1201_v31 = vsel %vm1194_vm2, %v2697_v13, -inf  ;;  %v2021_v54 = vpop.f32.mrf.mxu1 }
 0x12b   : > { %1199 = vmax.xlane.f32.xlu1 %v1198_v9  ;;  %1196 = vmax.xlane.f32.xlu0 %v1195_v10  ;;  %v1944_v11 = vpop.f32.mrf.mxu0  ;;  %v1442_v36 = vsel %vm1435_vm3, %v2697_v13, -inf }
 0x12c   : > { %v2703_v19 = vmul.f32 0.3125, %v709_v14  ;;  %v1945_v22 = vadd.f32 %v1944_v11, %v1943_v6  ;;  %v729_v59 = vpop.f32.mrf.mxu1 }
 0x12d   : > { %v1946_v17 = vpop.f32.mrf.mxu0 }
 0x12e   : > { %v786_v25 = vsel %vm776_vm0, %v2703_v19, -inf  ;;  %v714_v27 = vadd.f32 %v1945_v22, %v713_v18  ;;  %v963_v30 = vsel %vm953_vm1, %v2703_v19, -inf  ;;  %v1204_v35 = vsel %vm1194_vm2, %v2703_v19, -inf  ;;  %v2022_v2 = vpop.f32.mrf.mxu1 }
 0x12f   : > { %1440 = vmax.xlane.f32.xlu1 %v1439_v15  ;;  %1437 = vmax.xlane.f32.xlu0 %v1436_v16  ;;  %v1947_v23 = vpop.f32.mrf.mxu0  ;;  %v1445_v40 = vsel %vm1435_vm3, %v2703_v19, -inf }
 0x130   : > { %v1948_v28 = vadd.f32 %v1947_v23, %v1946_v17  ;;  %v2717_v33 = vmul.f32 0.3125, %v714_v27  ;;  %v732_v7 = vpop.f32.mrf.mxu1 }
 0x131   : > { %v1949_v32 = vpop.f32.mrf.mxu0 }
 0x132   : > { %v717_v34 = vadd.f32 %v1948_v28, %v716_v29  ;;  %v789_v39 = vsel %vm776_vm0, %v2717_v33, -inf  ;;  %v966_v43 = vsel %vm953_vm1, %v2717_v33, -inf  ;;  %v1207_v47 = vsel %vm1194_vm2, %v2717_v33, -inf }
 0x133   : > { %784 = vmax.xlane.f32.xlu1 %v783_v20  ;;  %781 = vmax.xlane.f32.xlu0 %v780_v21  ;;  %v1950_v37 = vpop.f32.mrf.mxu0  ;;  %v1448_v52 = vsel %vm1435_vm3, %v2717_v33, -inf }
 0x134   : > { %v2723_v38 = vmul.f32 0.3125, %v717_v34  ;;  %v1951_v44 = vadd.f32 %v1950_v37, %v1949_v32 }
 0x135   : > { %v1952_v41 = vpop.f32.mrf.mxu0 }
 0x136   : > { %v792_v42 = vsel %vm776_vm0, %v2723_v38, -inf  ;;  %v969_v46 = vsel %vm953_vm1, %v2723_v38, -inf  ;;  %v722_v49 = vadd.f32 %v2017_v12, %v1951_v44  ;;  %v1210_v51 = vsel %vm1194_vm2, %v2723_v38, -inf }
 0x137   : > { %787 = vmax.xlane.f32.xlu1 %v786_v25  ;;  %961 = vmax.xlane.f32.xlu0 %v960_v26  ;;  %v1953_v45 = vpop.f32.mrf.mxu0  ;;  %v1451_v61 = vsel %vm1435_vm3, %v2723_v38, -inf }
 0x138   : > { %v1954_v50 = vadd.f32 %v1953_v45, %v1952_v41  ;;  %v2741_v55 = vmul.f32 0.3125, %v722_v49 }
 0x139   : > { %v1955_v48 = vpop.f32.mrf.mxu0 }
 0x13a   : > { %v725_v56 = vadd.f32 %v2018_v24, %v1954_v50  ;;  %v795_v62 = vsel %vm776_vm0, %v2741_v55, -inf  ;;  %v972_v4 = vsel %vm953_vm1, %v2741_v55, -inf  ;;  %v1213_v9 = vsel %vm1194_vm2, %v2741_v55, -inf }
 0x13b   : > { %964 = vmax.xlane.f32.xlu1 %v963_v30  ;;  %1202 = vmax.xlane.f32.xlu0 %v1201_v31  ;;  %v1956_v53 = vpop.f32.mrf.mxu0  ;;  %v1454_v15 = vsel %vm1435_vm3, %v2741_v55, -inf }
 0x13c   : > { %v2743_v60 = vmul.f32 0.3125, %v725_v56  ;;  %v1957_v63 = vadd.f32 %v1956_v53, %v1955_v48 }
 0x13d   : > { %v1958_v58 = vpop.f32.mrf.mxu0 }
 0x13e   : > { %v798_v3 = vsel %vm776_vm0, %v2743_v60, -inf  ;;  %v730_v5 = vadd.f32 %v1957_v63, %v729_v59  ;;  %v975_v8 = vsel %vm953_vm1, %v2743_v60, -inf  ;;  %v1216_v14 = vsel %vm1194_vm2, %v2743_v60, -inf }
 0x13f   : > { %1205 = vmax.xlane.f32.xlu1 %v1204_v35  ;;  %1443 = vmax.xlane.f32.xlu0 %v1442_v36  ;;  %v1959_v1 = vpop.f32.mrf.mxu0  ;;  %v1457_v20 = vsel %vm1435_vm3, %v2743_v60, -inf  ;;  %v2025_v35 = vpop.f32.mrf.mxu1 }
 0x140   : > { %v1960_v6 = vadd.f32 %v1959_v1, %v1958_v58  ;;  %v2757_v11 = vmul.f32 0.3125, %v730_v5 }
 0x141   : > { %v1961_v10 = vpop.f32.mrf.mxu0 }
 0x142   : > { %v733_v12 = vadd.f32 %v1960_v6, %v732_v7  ;;  %v801_v18 = vsel %vm776_vm0, %v2757_v11, -inf  ;;  %v978_v23 = vsel %vm953_vm1, %v2757_v11, -inf  ;;  %v1219_v27 = vsel %vm1194_vm2, %v2757_v11, -inf }
 0x143   : > { %1446 = vmax.xlane.f32.xlu1 %v1445_v40  ;;  %790 = vmax.xlane.f32.xlu0 %v789_v39  ;;  %v1962_v16 = vpop.f32.mrf.mxu0  ;;  %v1460_v32 = vsel %vm1435_vm3, %v2757_v11, -inf  ;;  %v745_v40 = vpop.f32.mrf.mxu1 }
 0x144   : > { %v2763_v17 = vmul.f32 0.3125, %v733_v12  ;;  %v1963_v24 = vadd.f32 %v1962_v16, %v1961_v10 }
 0x145   : > { %v1964_v21 = vpop.f32.mrf.mxu0 }
 0x146   : > { %v804_v22 = vsel %vm776_vm0, %v2763_v17, -inf  ;;  %v981_v26 = vsel %vm953_vm1, %v2763_v17, -inf  ;;  %v738_v29 = vadd.f32 %v2021_v54, %v1963_v24  ;;  %v1222_v31 = vsel %vm1194_vm2, %v2763_v17, -inf }
 0x147   : > { %793 = vmax.xlane.f32.xlu1 %v792_v42  ;;  %967 = vmax.xlane.f32.xlu0 %v966_v43  ;;  %v1965_v25 = vpop.f32.mrf.mxu0  ;;  %v1463_v42 = vsel %vm1435_vm3, %v2763_v17, -inf }
 0x148   : > { %v1966_v30 = vadd.f32 %v1965_v25, %v1964_v21  ;;  %v2781_v36 = vmul.f32 0.3125, %v738_v29 }
 0x149   : > { %v1967_v28 = vpop.f32.mrf.mxu0 }
 0x14a   : > { %v741_v37 = vadd.f32 %v2022_v2, %v1966_v30  ;;  %v807_v43 = vsel %vm776_vm0, %v2781_v36, -inf  ;;  %v984_v48 = vsel %vm953_vm1, %v2781_v36, -inf  ;;  %v1225_v53 = vsel %vm1194_vm2, %v2781_v36, -inf }
 0x14b   : > { %970 = vmax.xlane.f32.xlu1 %v969_v46  ;;  %1208 = vmax.xlane.f32.xlu0 %v1207_v47  ;;  %v1968_v34 = vpop.f32.mrf.mxu0  ;;  %v2026_v46 = vpop.f32.mrf.mxu1 }
 0x14c   : > { %v2783_v41 = vmul.f32 0.3125, %v741_v37  ;;  %v1969_v44 = vadd.f32 %v1968_v34, %v1967_v28 }
 0x14d   : > { %v1970_v39 = vpop.f32.mrf.mxu0 }
 0x14e   : > { %v810_v47 = vsel %vm776_vm0, %v2783_v41, -inf  ;;  %v746_v49 = vadd.f32 %v1969_v44, %v745_v40  ;;  %v1228_v59 = vsel %vm1194_vm2, %v2783_v41, -inf  ;;  %v1469_v2 = vsel %vm1435_vm3, %v2783_v41, -inf }
 0x14f   : > { %1211 = vmax.xlane.f32.xlu1 %v1210_v51  ;;  %1449 = vmax.xlane.f32.xlu0 %v1448_v52  ;;  %v1971_v45 = vpop.f32.mrf.mxu0  ;;  %v748_v51 = vpop.f32.mrf.mxu1  ;;  %v987_v52 = vsel %vm953_vm1, %v2783_v41, -inf }
 0x150   : > { %v1972_v50 = vadd.f32 %v1971_v45, %v1970_v39  ;;  %v2797_v56 = vmul.f32 0.3125, %v746_v49 }
 0x151   : > { %v1973_v54 = vpop.f32.mrf.mxu0 }
 0x152   : > { %v749_v58 = vadd.f32 %v1972_v50, %v748_v51  ;;  %v813_v1 = vsel %vm776_vm0, %v2797_v56, -inf  ;;  %v990_v5 = vsel %vm953_vm1, %v2797_v56, -inf }
 0x153   : > { %1452 = vmax.xlane.f32.xlu1 %v1451_v61  ;;  %796 = vmax.xlane.f32.xlu0 %v795_v62  ;;  %v1466_v61 = vsel %vm1435_vm3, %v2781_v36, -inf  ;;  %v1974_v62 = vpop.f32.mrf.mxu0 }
 0x154   : > { %v2803_v63 = vmul.f32 0.3125, %v749_v58  ;;  %v1975_v6 = vadd.f32 %v1974_v62, %v1973_v54 }
 0x156   : > { %v754_v10 = vadd.f32 %v2025_v35, %v1975_v6  ;;  %v1475_v21 = vsel %vm1435_vm3, %v2803_v63, -inf }
 0x157   : > { %799 = vmax.xlane.f32.xlu1 %v798_v3  ;;  %973 = vmax.xlane.f32.xlu0 %v972_v4  ;;  %v1976_v3 = vpop.f32.mrf.mxu0  ;;  %v816_v4 = vsel %vm776_vm0, %v2803_v63, -inf }
 0x158   : > { %v2821_v16 = vmul.f32 0.3125, %v754_v10 }
 0x159   : > { %v1977_v7 = vpop.f32.mrf.mxu0 }
 0x15a   : > { %v1978_v12 = vadd.f32 %v1977_v7, %v1976_v3  ;;  %v996_v24 = vsel %vm953_vm1, %v2821_v16, -inf  ;;  %v1478_v28 = vsel %vm1435_vm3, %v2821_v16, -inf }
 0x15b   : > { %976 = vmax.xlane.f32.xlu1 %v975_v8  ;;  %1214 = vmax.xlane.f32.xlu0 %v1213_v9  ;;  %v993_v8 = vsel %vm953_vm1, %v2803_v63, -inf  ;;  %v1231_v9 = vsel %vm1194_vm2, %v2797_v56, -inf }
 0x15f   : > { %1217 = vmax.xlane.f32.xlu1 %v1216_v14  ;;  %1455 = vmax.xlane.f32.xlu0 %v1454_v15  ;;  %v1234_v14 = vsel %vm1194_vm2, %v2803_v63, -inf  ;;  %v1472_v15 = vsel %vm1435_vm3, %v2797_v56, -inf }
 0x163   : > { %1458 = vmax.xlane.f32.xlu1 %v1457_v20  ;;  %802 = vmax.xlane.f32.xlu0 %v801_v18  ;;  %v757_v18 = vadd.f32 %v2026_v46, %v1978_v12 }
 0x165   : > { %v2823_v20 = vmul.f32 0.3125, %v757_v18 }
 0x167   : > { %805 = vmax.xlane.f32.xlu1 %v804_v22  ;;  %979 = vmax.xlane.f32.xlu0 %v978_v23  ;;  %v819_v22 = vsel %vm776_vm0, %v2821_v16, -inf  ;;  %v822_v23 = vsel %vm776_vm0, %v2823_v20, -inf  ;;  %v999_v25 = vsel %vm953_vm1, %v2823_v20, -inf  ;;  %v1481_v29 = vsel %vm1435_vm3, %v2823_v20, -inf }
 0x16b   : > { %982 = vmax.xlane.f32.xlu1 %v981_v26  ;;  %1220 = vmax.xlane.f32.xlu0 %v1219_v27  ;;  %v1237_v26 = vsel %vm1194_vm2, %v2821_v16, -inf  ;;  %v1240_v27 = vsel %vm1194_vm2, %v2823_v20, -inf }
 0x16f   : > { %1223 = vmax.xlane.f32.xlu1 %v1222_v31  ;;  %1461 = vmax.xlane.f32.xlu0 %v1460_v32 }
 0x173   : > { %1464 = vmax.xlane.f32.xlu1 %v1463_v42  ;;  %808 = vmax.xlane.f32.xlu0 %v807_v43 }
 0x177   : > { %811 = vmax.xlane.f32.xlu1 %v810_v47  ;;  %985 = vmax.xlane.f32.xlu0 %v984_v48 }
 0x17b   : > { %988 = vmax.xlane.f32.xlu1 %v987_v52  ;;  %1226 = vmax.xlane.f32.xlu0 %v1225_v53 }
 0x17f   : > { %1229 = vmax.xlane.f32.xlu1 %v1228_v59  ;;  %1467 = vmax.xlane.f32.xlu0 %v1466_v61 }
 0x183   : > { %1470 = vmax.xlane.f32.xlu1 %v1469_v2  ;;  %814 = vmax.xlane.f32.xlu0 %v813_v1 }
 0x187   : > { %817 = vmax.xlane.f32.xlu1 %v816_v4  ;;  %991 = vmax.xlane.f32.xlu0 %v990_v5 }
 0x18b   : > { %994 = vmax.xlane.f32.xlu1 %v993_v8  ;;  %1232 = vmax.xlane.f32.xlu0 %v1231_v9 }
 0x18f   : > { %1235 = vmax.xlane.f32.xlu1 %v1234_v14  ;;  %1473 = vmax.xlane.f32.xlu0 %v1472_v15 }
 0x193   : > { %1476 = vmax.xlane.f32.xlu1 %v1475_v21  ;;  %820 = vmax.xlane.f32.xlu0 %v819_v22 }
 0x197   : > { %823 = vmax.xlane.f32.xlu1 %v822_v23  ;;  %997 = vmax.xlane.f32.xlu0 %v996_v24 }
 0x19b   : > { %1000 = vmax.xlane.f32.xlu1 %v999_v25  ;;  %1238 = vmax.xlane.f32.xlu0 %v1237_v26 }
 0x19f   : > { %1241 = vmax.xlane.f32.xlu1 %v1240_v27  ;;  %1479 = vmax.xlane.f32.xlu0 %v1478_v28 }
 0x1a3   : > { %1482 = vmax.xlane.f32.xlu1 %v1481_v29 }
 0x1ac   : > { %v779_v30 = vpop.xlane.xlu0 %778 }
 0x1ad   : > { %v825_v1 = vsub.f32 %v2683_v57, %v779_v30 }
 0x1af   : > { %v841_v3 = vmul.f32 1.442695, %v825_v1 }
 0x1b0   : > { %v959_v31 = vpop.xlane.xlu1 %958  ;;  %v956_v32 = vpop.xlane.xlu0 %955 }
 0x1b1   : > { %v1003_v34 = vsub.f32 %v2687_v0, %v959_v31  ;;  %v1002_v35 = vsub.f32 %v2683_v57, %v956_v32 }
 0x1b3   : > { %v1020_v37 = vmul.f32 1.442695, %v1003_v34  ;;  %v1018_v39 = vmul.f32 1.442695, %v1002_v35 }
 0x1b4   : > { %v1200_v40 = vpop.xlane.xlu1 %1199  ;;  %v1197_v42 = vpop.xlane.xlu0 %1196 }
 0x1b5   : > { %2164 = vpow2.f32 %v1020_v37  ;;  %v1244_v43 = vsub.f32 %v2687_v0, %v1200_v40  ;;  %v1243_v44 = vsub.f32 %v2683_v57, %v1197_v42 }
 0x1b6   : > { %2166 = vpow2.f32 %v1018_v39 }
 0x1b7   : > { %v1261_v45 = vmul.f32 1.442695, %v1244_v43  ;;  %v1259_v46 = vmul.f32 1.442695, %v1243_v44 }
 0x1b8   : > { %v1441_v47 = vpop.xlane.xlu1 %1440  ;;  %v1438_v48 = vpop.xlane.xlu0 %1437 }
 0x1b9   : > { %2168 = vpow2.f32 %v1261_v45  ;;  %v1485_v49 = vsub.f32 %v2687_v0, %v1441_v47  ;;  %v1484_v50 = vsub.f32 %v2683_v57, %v1438_v48 }
 0x1ba   : > { %2170 = vpow2.f32 %v1259_v46 }
 0x1bb   : > { %v1502_v51 = vmul.f32 1.442695, %v1485_v49  ;;  %v1500_v52 = vmul.f32 1.442695, %v1484_v50 }
 0x1bc   : > { %v782_v2 = vpop.xlane.xlu0 %781  ;;  %v785_v7 = vpop.xlane.xlu1 %784 }
 0x1bd   : > { %2172 = vpow2.f32 %v1502_v51  ;;  %v826_v4 = vsub.f32 %v2687_v0, %v782_v2  ;;  %v827_v42 = vsub.f32 %v2697_v13, %v785_v7 }
 0x1be   : > { %2174 = vpow2.f32 %v1500_v52 }
 0x1bf   : > { %2176 = vpow2.f32 %v841_v3  ;;  %v843_v5 = vmul.f32 1.442695, %v826_v4  ;;  %v845_v44 = vmul.f32 1.442695, %v827_v42 }
 0x1c0   : > { %v962_v6 = vpop.xlane.xlu0 %961  ;;  %v788_v9 = vpop.xlane.xlu1 %787 }
 0x1c1   : > { %2178 = vpow2.f32 %v843_v5  ;;  %v1004_v14 = vsub.f32 %v2697_v13, %v962_v6  ;;  %v828_v48 = vsub.f32 %v2703_v19, %v788_v9 }
 0x1c2   : > { %v2849_v53 = vpop.eup %2164 }
 0x1c3   : > { %v2851_v54 = vpop.eup %2166  ;;  %1068 = vrot.lane.b32.xlu1 %v2849_v53, %s2519_s22  ;;  %v1022_v21 = vmul.f32 1.442695, %v1004_v14  ;;  %v847_v49 = vmul.f32 1.442695, %v828_v48 }
 0x1c4   : > { %1066 = vrot.lane.b32.xlu0 %v2851_v54, %s2519_s22  ;;  %v1203_v8 = vpop.xlane.xlu0 %1202  ;;  %v965_v18 = vpop.xlane.xlu1 %964 }
 0x1c5   : > { %v1245_v22 = vsub.f32 %v2697_v13, %v1203_v8  ;;  %2180 = vpow2.f32 %v1022_v21  ;;  %v1005_v26 = vsub.f32 %v2703_v19, %v965_v18 }
 0x1c6   : > { %v2857_v58 = vpop.eup %2168 }
 0x1c7   : > { %v2859_v59 = vpop.eup %2170  ;;  %1309 = vrot.lane.b32.xlu1 %v2857_v58, %s2520_s8  ;;  %v1263_v27 = vmul.f32 1.442695, %v1245_v22  ;;  %v1024_v28 = vmul.f32 1.442695, %v1005_v26 }
 0x1c8   : > { %1307 = vrot.lane.b32.xlu0 %v2859_v59, %s2520_s8  ;;  %v1444_v12 = vpop.xlane.xlu0 %1443  ;;  %v1206_v25 = vpop.xlane.xlu1 %1205 }
 0x1c9   : > { %v1486_v0 = vsub.f32 %v2697_v13, %v1444_v12  ;;  %v1246_v29 = vsub.f32 %v2703_v19, %v1206_v25 }
 0x1ca   : > { %v2865_v61 = vpop.eup %2172 }
 0x1cb   : > { %v2867_v62 = vpop.eup %2174  ;;  %1550 = vrot.lane.b32.xlu1 %v2865_v61, %s2521_s9  ;;  %v1504_v24 = vmul.f32 1.442695, %v1486_v0  ;;  %v1265_v31 = vmul.f32 1.442695, %v1246_v29 }
 0x1cc   : > { %1548 = vrot.lane.b32.xlu0 %v2867_v62, %s2521_s9  ;;  %v2875_v10 = vpop.eup %2176  ;;  %v1447_v30 = vpop.xlane.xlu1 %1446 }
 0x1cd   : > { %v873_v15 = vsel %vm776_vm0, %v2875_v10, 0.0  ;;  %2182 = vpow2.f32 %v1504_v24  ;;  %v1487_v32 = vsub.f32 %v2703_v19, %v1447_v30  ;;  %v791_v46 = vpop.xlane.xlu0 %790 }
 0x1ce   : > { %v2880_v57 = vpop.eup %2178  ;;  %2184 = vpow2.f32 %v1263_v27 }
 0x1cf   : > { %v876_v23 = vsel %vm776_vm0, %v2880_v57, 0.0  ;;  %2186 = vpow2.f32 %v1024_v28  ;;  %v1506_v34 = vmul.f32 1.442695, %v1487_v32  ;;  %v829_v28 = vsub.f32 %v2717_v33, %v791_v46 }
 0x1d0   : > { %2188 = vpow2.f32 %v1265_v31  ;;  %v794_v1 = vpop.xlane.xlu1 %793 }
 0x1d1   : > { %2190 = vpow2.f32 %v1506_v34  ;;  %v968_v47 = vpop.xlane.xlu0 %967  ;;  %v849_v30 = vmul.f32 1.442695, %v829_v28  ;;  %v830_v42 = vsub.f32 %v2723_v38, %v794_v1 }
 0x1d2   : > { %v2889_v35 = vpop.eup %2180  ;;  %2192 = vpow2.f32 %v845_v44  ;;  %v1006_v52 = vsub.f32 %v2717_v33, %v968_v47 }
 0x1d3   : > { %2194 = vpow2.f32 %v847_v49  ;;  %v851_v44 = vmul.f32 1.442695, %v830_v42 }
 0x1d4   : > { %v1026_v2 = vmul.f32 1.442695, %v1006_v52  ;;  %v971_v5 = vpop.xlane.xlu1 %970 }
 0x1d5   : > { %v1209_v50 = vpop.xlane.xlu0 %1208  ;;  %v1007_v9 = vsub.f32 %v2723_v38, %v971_v5 }
 0x1d6   : > { %v1247_v3 = vsub.f32 %v2717_v33, %v1209_v50  ;;  %2196 = vpow2.f32 %v1026_v2 }
 0x1d7   : > { %v1028_v14 = vmul.f32 1.442695, %v1007_v9 }
 0x1d8   : > { %v1267_v6 = vmul.f32 1.442695, %v1247_v3  ;;  %v1212_v8 = vpop.xlane.xlu1 %1211 }
 0x1d9   : > { %v1450_v4 = vpop.xlane.xlu0 %1449 }
 0x1da   : > { %v2891_v37 = vpop.eup %2182  ;;  %v1488_v19 = vsub.f32 %v2717_v33, %v1450_v4  ;;  %2198 = vpow2.f32 %v1267_v6 }
 0x1db   : > { %v2897_v39 = vpop.eup %2184 }
 0x1dc   : > { %v2901_v40 = vpop.eup %2186  ;;  %v1508_v7 = vmul.f32 1.442695, %v1488_v19  ;;  %v1453_v0 = vpop.xlane.xlu1 %1452 }
 0x1dd   : > { %v2906_v43 = vpop.eup %2188  ;;  %v797_v32 = vpop.xlane.xlu0 %796 }
 0x1de   : > { %v2910_v45 = vpop.eup %2190  ;;  %2200 = vpow2.f32 %v1508_v7  ;;  %v831_v28 = vsub.f32 %v2741_v55, %v797_v32 }
 0x1df   : > { %v2915_v13 = vpop.eup %2192  ;;  %2202 = vpow2.f32 %v1028_v14 }
 0x1e0   : > { %v879_v51 = vsel %vm776_vm0, %v2915_v13, 0.0  ;;  %v2923_v12 = vpop.eup %2194  ;;  %v800_v49 = vpop.xlane.xlu1 %799 }
 0x1e1   : > { %v882_v18 = vsel %vm776_vm0, %v2923_v12, 0.0  ;;  %v974_v34 = vpop.xlane.xlu0 %973 }
 0x1e2   : > { %v1008_v48 = vsub.f32 %v2741_v55, %v974_v34  ;;  %v853_v34 = vmul.f32 1.442695, %v831_v28 }
 0x1e3   : > { %v2928_v21 = vpop.eup %2196 }
 0x1e4   : > { %v1030_v50 = vmul.f32 1.442695, %v1008_v48  ;;  %v977_v2 = vpop.xlane.xlu1 %976 }
 0x1e5   : > { %v1215_v46 = vpop.xlane.xlu0 %1214  ;;  %v1009_v5 = vsub.f32 %v2743_v60, %v977_v2 }
 0x1e7   : > { %v2933_v24 = vpop.eup %2198  ;;  %v1032_v19 = vmul.f32 1.442695, %v1009_v5 }
 0x1e8   : > { %v1218_v4 = vpop.xlane.xlu1 %1217 }
 0x1e9   : > { %v1456_v52 = vpop.xlane.xlu0 %1455  ;;  %v1250_v7 = vsub.f32 %v2743_v60, %v1218_v4 }
 0x1eb   : > { %874 = vadd.xlane.f32.xlu0 %v873_v15  ;;  %v1248_v15 = vsub.f32 %v2723_v38, %v1212_v8  ;;  %v2937_v26 = vpop.eup %2200 }
 0x1ec   : > { %v2941_v27 = vpop.eup %2202  ;;  %v1459_v9 = vpop.xlane.xlu1 %1458 }
 0x1ed   : > { %v1269_v22 = vmul.f32 1.442695, %v1248_v15  ;;  %v1273_v15 = vmul.f32 1.442695, %v1250_v7 }
 0x1ef   : > { %877 = vadd.xlane.f32.xlu1 %v876_v23  ;;  %v1489_v23 = vsub.f32 %v2723_v38, %v1453_v0  ;;  %2204 = vpow2.f32 %v1269_v22  ;;  %v1490_v38 = vsub.f32 %v2741_v55, %v1456_v52 }
 0x1f0   : > { %v806_v52 = vpop.xlane.xlu1 %805 }
 0x1f1   : > { %v1510_v25 = vmul.f32 1.442695, %v1489_v23  ;;  %v1512_v1 = vmul.f32 1.442695, %v1490_v38 }
 0x1f3   : > { %2206 = vpow2.f32 %v1510_v25 }
 0x1f4   : > { %2208 = vpow2.f32 %v849_v30 }
 0x1f5   : > { %2210 = vpow2.f32 %v851_v44  ;;  %v803_v44 = vpop.xlane.xlu0 %802 }
 0x1f6   : > { %2212 = vpow2.f32 %v1030_v50 }
 0x1fc   : > { %v2946_v29 = vpop.eup %2204 }
 0x200   : > { %1070 = vrot.lane.b32.xlu1 %v2889_v35, %s2519_s22  ;;  %v2950_v31 = vpop.eup %2206 }
 0x201   : > { %1552 = vrot.lane.b32.xlu0 %v2891_v37, %s2521_s9  ;;  %v2955_v33 = vpop.eup %2208 }
 0x202   : > { %v885_v47 = vsel %vm776_vm0, %v2955_v33, 0.0  ;;  %v2963_v6 = vpop.eup %2210 }
 0x203   : > { %v888_v8 = vsel %vm776_vm0, %v2963_v6, 0.0  ;;  %v2968_v14 = vpop.eup %2212 }
 0x204   : > { %1311 = vrot.lane.b32.xlu1 %v2897_v39, %s2520_s8 }
 0x208   : > { %1072 = vrot.lane.b32.xlu1 %v2901_v40, %s2519_s22 }
 0x20c   : > { %1313 = vrot.lane.b32.xlu1 %v2906_v43, %s2520_s8 }
 0x210   : > { %1554 = vrot.lane.b32.xlu1 %v2910_v45, %s2521_s9 }
 0x220   : > { %880 = vadd.xlane.f32.xlu0 %v879_v51  ;;  %v1249_v51 = vsub.f32 %v2741_v55, %v1215_v46  ;;  %v980_v46 = vpop.xlane.xlu0 %979 }
 0x222   : > { %v1271_v3 = vmul.f32 1.442695, %v1249_v51  ;;  %v1010_v51 = vsub.f32 %v2757_v11, %v980_v46 }
 0x224   : > { %2214 = vpow2.f32 %v1271_v3  ;;  %v1221_v48 = vpop.xlane.xlu0 %1220  ;;  %v1034_v2 = vmul.f32 1.442695, %v1010_v51 }
 0x225   : > { %2216 = vpow2.f32 %v1512_v1  ;;  %v1251_v3 = vsub.f32 %v2757_v11, %v1221_v48  ;;  %v983_v1 = vpop.xlane.xlu1 %982 }
 0x226   : > { %2218 = vpow2.f32 %v1032_v19  ;;  %v1011_v19 = vsub.f32 %v2763_v17, %v983_v1 }
 0x227   : > { %2220 = vpow2.f32 %v1273_v15  ;;  %v1275_v4 = vmul.f32 1.442695, %v1251_v3 }
 0x228   : > { %v1462_v38 = vpop.xlane.xlu0 %1461 }
 0x229   : > { %v1224_v5 = vpop.xlane.xlu1 %1223 }
 0x231   : > { %v2973_v0 = vpop.eup %2214 }
 0x232   : > { %v2977_v23 = vpop.eup %2216 }
 0x233   : > { %v2981_v25 = vpop.eup %2218 }
 0x234   : > { %883 = vadd.xlane.f32.xlu1 %v882_v18  ;;  %v1491_v18 = vsub.f32 %v2743_v60, %v1459_v9  ;;  %v2986_v30 = vpop.eup %2220  ;;  %v1252_v9 = vsub.f32 %v2763_v17, %v1224_v5 }
 0x235   : > { %3486 = vst [vmem:[#allocation5_spill] sm:$0xff] %v2986_v30 }
 0x236   : > { %1074 = vrot.lane.b32.xlu0 %v2928_v21, %s2519_s22  ;;  %v1514_v22 = vmul.f32 1.442695, %v1491_v18  ;;  %v1465_v18 = vpop.xlane.xlu1 %1464  ;;  %v1277_v28 = vmul.f32 1.442695, %v1252_v9 }
 0x238   : > { %2222 = vpow2.f32 %v1514_v22 }
 0x239   : > { %2224 = vpow2.f32 %v853_v34  ;;  %v1493_v34 = vsub.f32 %v2763_v17, %v1465_v18 }
 0x23a   : > { %1315 = vrot.lane.b32.xlu0 %v2933_v24, %s2520_s8 }
 0x23e   : > { %1556 = vrot.lane.b32.xlu0 %v2937_v26, %s2521_s9 }
 0x245   : > { %1076 = vrot.lane.b32.xlu1 %v2941_v27, %s2519_s22  ;;  %v2990_v42 = vpop.eup %2222 }
 0x246   : > { %3487 = vst [vmem:[#allocation6_spill] sm:$0xff] %v2990_v42  ;;  %v2995_v55 = vpop.eup %2224 }
 0x247   : > { %v891_v50 = vsel %vm776_vm0, %v2995_v55, 0.0 }
 0x249   : > { %1317 = vrot.lane.b32.xlu1 %v2946_v29, %s2520_s8 }
 0x24d   : > { %1558 = vrot.lane.b32.xlu1 %v2950_v31, %s2521_s9 }
 0x25d   : > { %886 = vadd.xlane.f32.xlu0 %v885_v47  ;;  %v832_v47 = vsub.f32 %v2743_v60, %v800_v49  ;;  %v1492_v60 = vsub.f32 %v2757_v11, %v1462_v38  ;;  %v809_v38 = vpop.xlane.xlu0 %808 }
 0x25f   : > { %v855_v32 = vmul.f32 1.442695, %v832_v47  ;;  %v1516_v49 = vmul.f32 1.442695, %v1492_v60  ;;  %v1518_v47 = vmul.f32 1.442695, %v1493_v34 }
 0x261   : > { %2226 = vpow2.f32 %v855_v32  ;;  %v986_v1 = vpop.xlane.xlu0 %985 }
 0x262   : > { %2228 = vpow2.f32 %v1034_v2  ;;  %v1012_v5 = vsub.f32 %v2781_v36, %v986_v1 }
 0x263   : > { %2230 = vpow2.f32 %v1275_v4  ;;  %v834_v4 = vsub.f32 %v2763_v17, %v806_v52 }
 0x264   : > { %2232 = vpow2.f32 %v1516_v49 }
 0x265   : > { %v1227_v60 = vpop.xlane.xlu0 %1226 }
 0x266   : > { %v1253_v9 = vsub.f32 %v2781_v36, %v1227_v60 }
 0x26e   : > { %v3003_v7 = vpop.eup %2226 }
 0x26f   : > { %3488 = vst [vmem:[#allocation7_spill] sm:$0xff] %v3003_v7  ;;  %v894_v15 = vsel %vm776_vm0, %v3003_v7, 0.0  ;;  %v3008_v22 = vpop.eup %2228 }
 0x270   : > { %3489 = vst [vmem:[#allocation8_spill] sm:$0xff] %v3008_v22  ;;  %v3013_v46 = vpop.eup %2230 }
 0x271   : > { %889 = vadd.xlane.f32.xlu1 %v888_v8  ;;  %v1036_v8 = vmul.f32 1.442695, %v1011_v19  ;;  %3490 = vst [vmem:[#allocation9_spill] sm:$0xff] %v3013_v46  ;;  %v3017_v32 = vpop.eup %2232  ;;  %v812_v19 = vpop.xlane.xlu1 %811 }
 0x272   : > { %3491 = vst [vmem:[#allocation10_spill] sm:$0xff] %v3017_v32 }
 0x273   : > { %1078 = vrot.lane.b32.xlu0 %v2968_v14, %s2519_s22  ;;  %2234 = vpow2.f32 %v1036_v8  ;;  %v1038_v8 = vmul.f32 1.442695, %v1012_v5 }
 0x274   : > { %2236 = vpow2.f32 %v1277_v28  ;;  %v1279_v28 = vmul.f32 1.442695, %v1253_v9 }
 0x275   : > { %2238 = vpow2.f32 %v1518_v47  ;;  %v989_v18 = vpop.xlane.xlu1 %988 }
 0x276   : > { %v1013_v47 = vsub.f32 %v2783_v41, %v989_v18 }
 0x277   : > { %1319 = vrot.lane.b32.xlu0 %v2973_v0, %s2520_s8 }
 0x279   : > { %v1230_v34 = vpop.xlane.xlu1 %1229 }
 0x27a   : > { %v1254_v1 = vsub.f32 %v2783_v41, %v1230_v34 }
 0x27b   : > { %1560 = vrot.lane.b32.xlu0 %v2977_v23, %s2521_s9 }
 0x280   : > { %v3021_v48 = vpop.eup %2234 }
 0x281   : > { %3492 = vst [vmem:[#allocation11_spill] sm:$0xff] %v3021_v48  ;;  %v3026_v51 = vpop.eup %2236 }
 0x282   : > { %1080 = vrot.lane.b32.xlu1 %v2981_v25, %s2519_s22  ;;  %3493 = vst [vmem:[#allocation12_spill] sm:$0xff] %v3026_v51  ;;  %v3030_v3 = vpop.eup %2238 }
 0x283   : > { %3494 = vst [vmem:[#allocation13_spill] sm:$0xff] %v3030_v3 }
 0x286   : > { %1321 = vrot.lane.b32.xlu1 %v2986_v30, %s2520_s8 }
 0x28a   : > { %1562 = vrot.lane.b32.xlu1 %v2990_v42, %s2521_s9 }
 0x29a   : > { %892 = vadd.xlane.f32.xlu0 %v891_v50  ;;  %v833_v50 = vsub.f32 %v2757_v11, %v803_v44  ;;  %v859_v44 = vmul.f32 1.442695, %v834_v4 }
 0x29c   : > { %v857_v2 = vmul.f32 1.442695, %v833_v50 }
 0x29e   : > { %2240 = vpow2.f32 %v857_v2  ;;  %v1040_v2 = vmul.f32 1.442695, %v1013_v47 }
 0x29f   : > { %2242 = vpow2.f32 %v859_v44  ;;  %v1471_v44 = vpop.xlane.xlu1 %1470 }
 0x2a0   : > { %2244 = vpow2.f32 %v1038_v8  ;;  %v1495_v5 = vsub.f32 %v2783_v41, %v1471_v44 }
 0x2a1   : > { %2246 = vpow2.f32 %v1279_v28  ;;  %v835_v28 = vsub.f32 %v2781_v36, %v809_v38 }
 0x2a2   : > { %v1522_v9 = vmul.f32 1.442695, %v1495_v5 }
 0x2a3   : > { %v818_v5 = vpop.xlane.xlu1 %817 }
 0x2ab   : > { %v3035_v11 = vpop.eup %2240 }
 0x2ac   : > { %3495 = vst [vmem:[#allocation14_spill] sm:$0xff] %v3035_v11  ;;  %v897_v49 = vsel %vm776_vm0, %v3035_v11, 0.0  ;;  %v3043_v50 = vpop.eup %2242 }
 0x2ad   : > { %3496 = vst [vmem:[#allocation15_spill] sm:$0xff] %v3043_v50  ;;  %v900_v4 = vsel %vm776_vm0, %v3043_v50, 0.0  ;;  %v3048_v60 = vpop.eup %2244 }
 0x2ae   : > { %895 = vadd.xlane.f32.xlu1 %v894_v15  ;;  %v1468_v15 = vpop.xlane.xlu0 %1467  ;;  %3497 = vst [vmem:[#allocation16_spill] sm:$0xff] %v3048_v60  ;;  %v3053_v8 = vpop.eup %2246 }
 0x2af   : > { %v1494_v17 = vsub.f32 %v2781_v36, %v1468_v15  ;;  %3498 = vst [vmem:[#allocation17_spill] sm:$0xff] %v3053_v8 }
 0x2b0   : > { %1082 = vrot.lane.b32.xlu0 %v3008_v22, %s2519_s22 }
 0x2b1   : > { %v1520_v52 = vmul.f32 1.442695, %v1494_v17 }
 0x2b2   : > { %v815_v47 = vpop.xlane.xlu0 %814 }
 0x2b3   : > { %2248 = vpow2.f32 %v1520_v52  ;;  %v861_v52 = vmul.f32 1.442695, %v835_v28 }
 0x2b4   : > { %1323 = vrot.lane.b32.xlu0 %v3013_v46, %s2520_s8  ;;  %2250 = vpow2.f32 %v1040_v2 }
 0x2b6   : > { %v992_v2 = vpop.xlane.xlu0 %991 }
 0x2b8   : > { %1564 = vrot.lane.b32.xlu0 %v3017_v32, %s2521_s9 }
 0x2bf   : > { %1084 = vrot.lane.b32.xlu1 %v3021_v48, %s2519_s22 }
 0x2c0   : > { %v3057_v15 = vpop.eup %2248 }
 0x2c1   : > { %3499 = vst [vmem:[#allocation18_spill] sm:$0xff] %v3057_v15  ;;  %v3061_v18 = vpop.eup %2250 }
 0x2c2   : > { %3500 = vst [vmem:[#allocation19_spill] sm:$0xff] %v3061_v18 }
 0x2c3   : > { %1325 = vrot.lane.b32.xlu1 %v3026_v51, %s2520_s8 }
 0x2c7   : > { %1566 = vrot.lane.b32.xlu1 %v3030_v3, %s2521_s9 }
 0x2d7   : > { %898 = vadd.xlane.f32.xlu0 %v897_v49  ;;  %v1281_v49 = vmul.f32 1.442695, %v1254_v1  ;;  %v836_v1 = vsub.f32 %v2783_v41, %v812_v19 }
 0x2d9   : > { %2252 = vpow2.f32 %v1281_v49  ;;  %v863_v38 = vmul.f32 1.442695, %v836_v1  ;;  %v1014_v49 = vsub.f32 %v2797_v56, %v992_v2 }
 0x2da   : > { %2254 = vpow2.f32 %v1522_v9 }
 0x2db   : > { %2256 = vpow2.f32 %v861_v52  ;;  %v1042_v9 = vmul.f32 1.442695, %v1014_v49 }
 0x2dc   : > { %2258 = vpow2.f32 %v863_v38 }
 0x2dd   : > { %2260 = vpow2.f32 %v1042_v9 }
 0x2e6   : > { %v3066_v17 = vpop.eup %2252 }
 0x2e7   : > { %3501 = vst [vmem:[#allocation20_spill] sm:$0xff] %v3066_v17  ;;  %v3070_v34 = vpop.eup %2254 }
 0x2e8   : > { %3502 = vst [vmem:[#allocation21_spill] sm:$0xff] %v3070_v34  ;;  %v3075_v36 = vpop.eup %2256 }
 0x2e9   : > { %3503 = vst [vmem:[#allocation22_spill] sm:$0xff] %v3075_v36  ;;  %v903_v44 = vsel %vm776_vm0, %v3075_v36, 0.0 }
 0x2eb   : > { %901 = vadd.xlane.f32.xlu1 %v900_v4  ;;  %v1233_v4 = vpop.xlane.xlu0 %1232 }
 0x2ec   : > { %v1255_v28 = vsub.f32 %v2797_v56, %v1233_v4 }
 0x2ed   : > { %1086 = vrot.lane.b32.xlu0 %v3048_v60, %s2519_s22 }
 0x2ef   : > { %v1474_v52 = vpop.xlane.xlu0 %1473 }
 0x2f0   : > { %v1496_v41 = vsub.f32 %v2797_v56, %v1474_v52 }
 0x2f1   : > { %1327 = vrot.lane.b32.xlu0 %v3053_v8, %s2520_s8 }
 0x2f2   : > { %v1524_v19 = vmul.f32 1.442695, %v1496_v41  ;;  %v837_v41 = vsub.f32 %v2797_v56, %v815_v47 }
 0x2f5   : > { %1568 = vrot.lane.b32.xlu0 %v3057_v15, %s2521_s9  ;;  %v3083_v15 = vpop.eup %2258 }
 0x2f6   : > { %3504 = vst [vmem:[#allocation23_spill] sm:$0xff] %v3083_v15  ;;  %v906_v4 = vsel %vm776_vm0, %v3083_v15, 0.0  ;;  %v3088_v49 = vpop.eup %2260 }
 0x2f7   : > { %3505 = vst [vmem:[#allocation24_spill] sm:$0xff] %v3088_v49 }
 0x2fc   : > { %1088 = vrot.lane.b32.xlu1 %v3061_v18, %s2519_s22 }
 0x300   : > { %1329 = vrot.lane.b32.xlu1 %v3066_v17, %s2520_s8  ;;  %v1283_v17 = vmul.f32 1.442695, %v1255_v28 }
 0x302   : > { %2262 = vpow2.f32 %v1283_v17 }
 0x303   : > { %2264 = vpow2.f32 %v1524_v19 }
 0x304   : > { %1570 = vrot.lane.b32.xlu1 %v3070_v34, %s2521_s9  ;;  %v995_v34 = vpop.xlane.xlu1 %994 }
 0x305   : > { %v1015_v18 = vsub.f32 %v2803_v63, %v995_v34 }
 0x307   : > { %v1044_v2 = vmul.f32 1.442695, %v1015_v18 }
 0x308   : > { %v1236_v1 = vpop.xlane.xlu1 %1235 }
 0x309   : > { %v1256_v38 = vsub.f32 %v2803_v63, %v1236_v1  ;;  %2266 = vpow2.f32 %v1044_v2  ;;  %v865_v2 = vmul.f32 1.442695, %v837_v41 }
 0x30b   : > { %v1285_v17 = vmul.f32 1.442695, %v1256_v38 }
 0x30d   : > { %2268 = vpow2.f32 %v1285_v17 }
 0x30f   : > { %v3093_v9 = vpop.eup %2262 }
 0x310   : > { %3506 = vst [vmem:[#allocation25_spill] sm:$0xff] %v3093_v9  ;;  %v3097_v28 = vpop.eup %2264 }
 0x311   : > { %3507 = vst [vmem:[#allocation26_spill] sm:$0xff] %v3097_v28 }
 0x314   : > { %904 = vadd.xlane.f32.xlu0 %v903_v44  ;;  %v1477_v44 = vpop.xlane.xlu1 %1476 }
 0x315   : > { %v1497_v34 = vsub.f32 %v2803_v63, %v1477_v44  ;;  %v821_v44 = vpop.xlane.xlu0 %820 }
 0x316   : > { %v3101_v52 = vpop.eup %2266 }
 0x317   : > { %v1526_v18 = vmul.f32 1.442695, %v1497_v34  ;;  %3508 = vst [vmem:[#allocation27_spill] sm:$0xff] %v3101_v52  ;;  %v838_v34 = vsub.f32 %v2803_v63, %v818_v5 }
 0x318   : > { %v3104_v19 = vpop.xlane.xlu1 %823 }
 0x319   : > { %2270 = vpow2.f32 %v1526_v18  ;;  %v998_v47 = vpop.xlane.xlu0 %997 }
 0x31a   : > { %v3108_v1 = vpop.eup %2268  ;;  %2272 = vpow2.f32 %v865_v2  ;;  %v1016_v2 = vsub.f32 %v2821_v16, %v998_v47 }
 0x31b   : > { %3509 = vst [vmem:[#allocation28_spill] sm:$0xff] %v3108_v1 }
 0x31c   : > { %v1001_v38 = vpop.xlane.xlu1 %1000 }
 0x320   : > { %v1242_v56 = vpop.xlane.xlu1 %1241 }
 0x324   : > { %v1483_v17 = vpop.xlane.xlu1 %1482 }
 0x328   : > { %907 = vadd.xlane.f32.xlu1 %v906_v4  ;;  %v3112_v4 = vpop.eup %2270  ;;  %v3119_v41 = vpop.permute.xlu1 %1068 }
 0x329   : > { %3510 = vst [vmem:[#allocation29_spill] sm:$0xff] %v3112_v4  ;;  %v3117_v18 = vpop.eup %2272 }
 0x32a   : > { %1090 = vrot.lane.b32.xlu0 %v3088_v49, %s2519_s22  ;;  %3511 = vst [vmem:[#allocation30_spill] sm:$0xff] %v3117_v18  ;;  %v1046_v49 = vmul.f32 1.442695, %v1016_v2 }
 0x32e   : > { %1331 = vrot.lane.b32.xlu0 %v3093_v9, %s2520_s8  ;;  %v3124_v9 = vpop.permute.xlu1 %1309 }
 0x332   : > { %1572 = vrot.lane.b32.xlu0 %v3097_v28, %s2521_s9  ;;  %v867_v28 = vmul.f32 1.442695, %v838_v34  ;;  %v3128_v8 = vpop.permute.xlu1 %1550 }
 0x334   : > { %2274 = vpow2.f32 %v867_v28  ;;  %v1017_v28 = vsub.f32 %v2823_v20, %v1001_v38  ;;  %v1499_v38 = vsub.f32 %v2823_v20, %v1483_v17 }
 0x335   : > { %2276 = vpow2.f32 %v1046_v49 }
 0x336   : > { %v3130_v60 = vpop.xlane.xlu1 %877  ;;  %v1048_v47 = vmul.f32 1.442695, %v1017_v28  ;;  %v1530_v28 = vmul.f32 1.442695, %v1499_v38 }
 0x339   : > { %1092 = vrot.lane.b32.xlu1 %v3101_v52, %s2519_s22  ;;  %v1239_v52 = vpop.xlane.xlu0 %1238 }
 0x33a   : > { %v1257_v15 = vsub.f32 %v2821_v16, %v1239_v52  ;;  %v1258_v52 = vsub.f32 %v2823_v20, %v1242_v56  ;;  %v1071_v49 = vpop.permute.xlu1 %1070 }
 0x33c   : > { %v1287_v5 = vmul.f32 1.442695, %v1257_v15 }
 0x33d   : > { %1333 = vrot.lane.b32.xlu1 %v3108_v1, %s2520_s8  ;;  %v909_v1 = vsel %vm776_vm0, %v3117_v18, 0.0 }
 0x33e   : > { %2278 = vpow2.f32 %v1287_v5  ;;  %v1312_v56 = vpop.permute.xlu1 %1311 }
 0x341   : > { %1574 = vrot.lane.b32.xlu1 %v3112_v4, %s2521_s9  ;;  %v1480_v4 = vpop.xlane.xlu0 %1479 }
 0x342   : > { %v1498_v36 = vsub.f32 %v2821_v16, %v1480_v4 }
 0x344   : > { %v1528_v34 = vmul.f32 1.442695, %v1498_v36  ;;  %v1289_v36 = vmul.f32 1.442695, %v1258_v52 }
 0x345   : > { %v1067_v63 = vpop.permute.xlu0 %1066 }
 0x346   : > { %2280 = vpow2.f32 %v1528_v34 }
 0x347   : > { %2282 = vpow2.f32 %v1048_v47  ;;  %v1073_v47 = vpop.permute.xlu1 %1072 }
 0x348   : > { %2284 = vpow2.f32 %v1289_v36 }
 0x349   : > { %v1308_v18 = vpop.permute.xlu0 %1307  ;;  %2286 = vpow2.f32 %v1530_v28 }
 0x34a   : > { %v1355_v42 = vsel %vm776_vm0, %v1308_v18, 0.0 }
 0x34b   : > { %v1314_v3 = vpop.permute.xlu1 %1313 }
 0x34d   : > { %v1549_v2 = vpop.permute.xlu0 %1548 }
 0x351   : > { %910 = vadd.xlane.f32.xlu0 %v909_v1  ;;  %v3133_v1 = vpop.eup %2274  ;;  %v3143_v5 = vpop.xlane.xlu0 %874 }
 0x352   : > { %3512 = vst [vmem:[#allocation31_spill] sm:$0xff] %v3133_v1  ;;  %v912_v15 = vsel %vm776_vm0, %v3133_v1, 0.0  ;;  %v3138_v4 = vpop.eup %2276 }
 0x353   : > { %3513 = vst [vmem:[#allocation32_spill] sm:$0xff] %v3138_v4  ;;  %v3145_v34 = vpop.eup %2278 }
 0x354   : > { %3514 = vst [vmem:[#allocation33_spill] sm:$0xff] %v3145_v34 }
 0x355   : > { %v1553_v1 = vpop.permute.xlu0 %1552 }
 0x359   : > { %v3153_v52 = vpop.xlane.xlu0 %880 }
 0x35d   : > { %v1075_v36 = vpop.permute.xlu0 %1074 }
 0x361   : > { %v1316_v50 = vpop.permute.xlu0 %1315 }
 0x365   : > { %913 = vadd.xlane.f32.xlu1 %v912_v15  ;;  %v3149_v15 = vpop.eup %2280 }
 0x366   : > { %3515 = vst [vmem:[#allocation34_spill] sm:$0xff] %v3149_v15  ;;  %v3155_v17 = vpop.eup %2282 }
 0x367   : > { %1094 = vrot.lane.b32.xlu0 %v3138_v4, %s2519_s22  ;;  %3516 = vst [vmem:[#allocation35_spill] sm:$0xff] %v3155_v17  ;;  %v839_v4 = vsub.f32 %v2821_v16, %v821_v44  ;;  %v3160_v38 = vpop.eup %2284  ;;  %v1557_v44 = vpop.permute.xlu0 %1556 }
 0x368   : > { %3517 = vst [vmem:[#allocation36_spill] sm:$0xff] %v3160_v38  ;;  %v3164_v28 = vpop.eup %2286 }
 0x369   : > { %3518 = vst [vmem:[#allocation37_spill] sm:$0xff] %v3164_v28 }
 0x36b   : > { %1335 = vrot.lane.b32.xlu0 %v3145_v34, %s2520_s8  ;;  %v869_v34 = vmul.f32 1.442695, %v839_v4  ;;  %v840_v4 = vsub.f32 %v2823_v20, %v3104_v19  ;;  %v1596_v20 = vsel %vm776_vm0, %v1549_v2, 0.0  ;;  %v1602_v2 = vsel %vm776_vm0, %v1553_v1, 0.0 }
 0x36c   : > { %v1599_v1 = vsel %vm776_vm0, %v3128_v8, 0.0  ;;  %v1608_v8 = vsel %vm776_vm0, %v1557_v44, 0.0 }
 0x36d   : > { %2288 = vpow2.f32 %v869_v34  ;;  %v871_v32 = vmul.f32 1.442695, %v840_v4 }
 0x36f   : > { %1576 = vrot.lane.b32.xlu0 %v3149_v15, %s2521_s9  ;;  %v1555_v15 = vpop.permute.xlu1 %1554  ;;  %2290 = vpow2.f32 %v871_v32 }
 0x373   : > { %v3168_v16 = vpop.xlane.xlu1 %883 }
 0x376   : > { %1096 = vrot.lane.b32.xlu1 %v3155_v17, %s2519_s22  ;;  %v3170_v17 = vpop.xlane.xlu0 %886 }
 0x377   : > { %v1077_v51 = vpop.permute.xlu1 %1076 }
 0x37a   : > { %1337 = vrot.lane.b32.xlu1 %v3160_v38, %s2520_s8  ;;  %v3174_v48 = vpop.eup %2288  ;;  %v1079_v11 = vpop.permute.xlu0 %1078 }
 0x37b   : > { %3519 = vst [vmem:[#allocation38_spill] sm:$0xff] %v3174_v48  ;;  %v1318_v38 = vpop.permute.xlu1 %1317  ;;  %v915_v34 = vsel %vm776_vm0, %v3174_v48, 0.0  ;;  %v1120_v48 = vsel %vm776_vm0, %v1071_v49, 0.0 }
 0x37c   : > { %v3184_v30 = vpop.eup %2290 }
 0x37d   : > { %3520 = vst [vmem:[#allocation39_spill] sm:$0xff] %v3184_v30  ;;  %v918_v18 = vsel %vm776_vm0, %v3184_v30, 0.0 }
 0x37e   : > { %1578 = vrot.lane.b32.xlu1 %v3164_v28, %s2521_s9  ;;  %v1114_v28 = vsel %vm776_vm0, %v1067_v63, 0.0  ;;  %v1320_v22 = vpop.permute.xlu0 %1319  ;;  %v1361_v63 = vsel %vm776_vm0, %v1312_v56, 0.0 }
 0x37f   : > { %v1559_v46 = vpop.permute.xlu1 %1558 }
 0x382   : > { %v1561_v19 = vpop.permute.xlu0 %1560 }
 0x383   : > { %v3180_v7 = vpop.xlane.xlu1 %889 }
 0x386   : > { %v3186_v32 = vpop.xlane.xlu0 %892 }
 0x387   : > { %v1081_v4 = vpop.permute.xlu1 %1080 }
 0x38e   : > { %916 = vadd.xlane.f32.xlu0 %v915_v34  ;;  %v1117_v34 = vsel %vm776_vm0, %v3119_v41, 0.0 }
 0x392   : > { %1115 = vadd.xlane.f32.xlu0 %v1114_v28  ;;  %v1322_v28 = vpop.permute.xlu1 %1321 }
 0x393   : > { %v1376_v44 = vsel %vm776_vm0, %v1322_v28, 0.0 }
 0x396   : > { %1356 = vadd.xlane.f32.xlu0 %v1355_v42  ;;  %v1083_v42 = vpop.permute.xlu0 %1082  ;;  %v1563_v49 = vpop.permute.xlu1 %1562 }
 0x39a   : > { %1597 = vadd.xlane.f32.xlu0 %v1596_v20  ;;  %v1123_v20 = vsel %vm776_vm0, %v1073_v47, 0.0  ;;  %v1324_v56 = vpop.permute.xlu0 %1323  ;;  %v3197_v30 = vpop.xlane.xlu1 %895  ;;  %v1126_v47 = vsel %vm776_vm0, %v1075_v36, 0.0  ;;  %v1132_v36 = vsel %vm776_vm0, %v1079_v11, 0.0  ;;  %v1617_v11 = vsel %vm776_vm0, %v1563_v49, 0.0 }
 0x39e   : > { %1121 = vadd.xlane.f32.xlu0 %v1120_v48  ;;  %v1358_v48 = vsel %vm776_vm0, %v3124_v9, 0.0  ;;  %v1565_v41 = vpop.permute.xlu0 %1564 }
 0x39f   : > { %v1620_v28 = vsel %vm776_vm0, %v1565_v41, 0.0 }
 0x3a2   : > { %1362 = vadd.xlane.f32.xlu0 %v1361_v63  ;;  %919 = vadd.xlane.f32.xlu1 %v918_v18  ;;  %v1364_v63 = vsel %vm776_vm0, %v1314_v3, 0.0  ;;  %v1605_v18 = vsel %vm776_vm0, %v1555_v15, 0.0  ;;  %v3204_v9 = vpop.xlane.xlu0 %898  ;;  %v1611_v15 = vsel %vm776_vm0, %v1559_v46, 0.0 }
 0x3a6   : > { %1603 = vadd.xlane.f32.xlu0 %v1602_v2  ;;  %1118 = vadd.xlane.f32.xlu1 %v1117_v34  ;;  %v1085_v2 = vpop.permute.xlu1 %1084  ;;  %v1367_v34 = vsel %vm776_vm0, %v1316_v50, 0.0 }
 0x3aa   : > { %1124 = vadd.xlane.f32.xlu0 %v1123_v20  ;;  %1359 = vadd.xlane.f32.xlu1 %v1358_v48  ;;  %v1129_v20 = vsel %vm776_vm0, %v1077_v51, 0.0  ;;  %v1326_v3 = vpop.permute.xlu1 %1325  ;;  %v1370_v48 = vsel %vm776_vm0, %v1318_v38, 0.0  ;;  %v1373_v51 = vsel %vm776_vm0, %v1320_v22, 0.0  ;;  %v1614_v38 = vsel %vm776_vm0, %v1561_v19, 0.0 }
 0x3ab   : > { %v1379_v22 = vsel %vm776_vm0, %v1324_v56, 0.0 }
 0x3ae   : > { %1365 = vadd.xlane.f32.xlu0 %v1364_v63  ;;  %1600 = vadd.xlane.f32.xlu1 %v1599_v1  ;;  %v1087_v63 = vpop.permute.xlu0 %1086  ;;  %v1567_v1 = vpop.permute.xlu1 %1566 }
 0x3b2   : > { %1127 = vadd.xlane.f32.xlu0 %v1126_v47  ;;  %1606 = vadd.xlane.f32.xlu1 %v1605_v18  ;;  %v1328_v50 = vpop.permute.xlu0 %1327  ;;  %v1135_v18 = vsel %vm776_vm0, %v1081_v4, 0.0  ;;  %v3214_v47 = vpop.xlane.xlu1 %901  ;;  %v1141_v4 = vsel %vm776_vm0, %v1085_v2, 0.0 }
 0x3b3   : > { %v1385_v2 = vsel %vm776_vm0, %v1328_v50, 0.0 }
 0x3b6   : > { %1368 = vadd.xlane.f32.xlu0 %v1367_v34  ;;  %1130 = vadd.xlane.f32.xlu1 %v1129_v20  ;;  %v1569_v34 = vpop.permute.xlu0 %1568  ;;  %v1089_v46 = vpop.permute.xlu1 %1088  ;;  %v1138_v20 = vsel %vm776_vm0, %v1083_v42, 0.0  ;;  %v1623_v42 = vsel %vm776_vm0, %v1567_v1, 0.0 }
 0x3ba   : > { %1609 = vadd.xlane.f32.xlu0 %v1608_v8  ;;  %1371 = vadd.xlane.f32.xlu1 %v1370_v48  ;;  %v3220_v8 = vpop.xlane.xlu0 %904  ;;  %v1330_v48 = vpop.permute.xlu1 %1329 }
 0x3be   : > { %1133 = vadd.xlane.f32.xlu0 %v1132_v36  ;;  %1612 = vadd.xlane.f32.xlu1 %v1611_v15  ;;  %v1091_v19 = vpop.permute.xlu0 %1090  ;;  %v1382_v15 = vsel %vm776_vm0, %v1326_v3, 0.0  ;;  %v1571_v49 = vpop.permute.xlu1 %1570  ;;  %v1144_v36 = vsel %vm776_vm0, %v1087_v63, 0.0  ;;  %v1626_v3 = vsel %vm776_vm0, %v1569_v34, 0.0 }
 0x3bf   : > { %v1629_v1 = vsel %vm776_vm0, %v1571_v49, 0.0 }
 0x3c2   : > { %1374 = vadd.xlane.f32.xlu0 %v1373_v51  ;;  %1136 = vadd.xlane.f32.xlu1 %v1135_v18  ;;  %v1332_v51 = vpop.permute.xlu0 %1331  ;;  %v3228_v56 = vpop.xlane.xlu1 %907  ;;  %v1147_v18 = vsel %vm776_vm0, %v1089_v46, 0.0 }
 0x3c3   : > { %v1391_v46 = vsel %vm776_vm0, %v1332_v51, 0.0 }
 0x3c6   : > { %1615 = vadd.xlane.f32.xlu0 %v1614_v38  ;;  %1377 = vadd.xlane.f32.xlu1 %v1376_v44  ;;  %v1573_v41 = vpop.permute.xlu0 %1572  ;;  %v1388_v38 = vsel %vm776_vm0, %v1330_v48, 0.0  ;;  %v1093_v44 = vpop.permute.xlu1 %1092 }
 0x3c7   : > { %v1632_v34 = vsel %vm776_vm0, %v1573_v41, 0.0 }
 0x3ca   : > { %1139 = vadd.xlane.f32.xlu0 %v1138_v20  ;;  %1618 = vadd.xlane.f32.xlu1 %v1617_v11  ;;  %v1150_v11 = vsel %vm776_vm0, %v1091_v19, 0.0  ;;  %v1334_v50 = vpop.permute.xlu1 %1333  ;;  %v1153_v20 = vsel %vm776_vm0, %v1093_v44, 0.0 }
 0x3ce   : > { %1380 = vadd.xlane.f32.xlu0 %v1379_v22  ;;  %1142 = vadd.xlane.f32.xlu1 %v1141_v4  ;;  %v1394_v4 = vsel %vm776_vm0, %v1334_v50, 0.0  ;;  %v1575_v48 = vpop.permute.xlu1 %1574 }
 0x3cf   : > { %v1635_v19 = vsel %vm776_vm0, %v1575_v48, 0.0 }
 0x3d2   : > { %1621 = vadd.xlane.f32.xlu0 %v1620_v28  ;;  %1383 = vadd.xlane.f32.xlu1 %v1382_v15 }
 0x3d6   : > { %1145 = vadd.xlane.f32.xlu0 %v1144_v36  ;;  %1624 = vadd.xlane.f32.xlu1 %v1623_v42 }
 0x3da   : > { %1386 = vadd.xlane.f32.xlu0 %v1385_v2  ;;  %1148 = vadd.xlane.f32.xlu1 %v1147_v18  ;;  %v3234_v63 = vpop.xlane.xlu0 %910 }
 0x3de   : > { %1627 = vadd.xlane.f32.xlu0 %v1626_v3  ;;  %1389 = vadd.xlane.f32.xlu1 %v1388_v38  ;;  %v1095_v22 = vpop.permute.xlu0 %1094 }
 0x3df   : > { %v1156_v15 = vsel %vm776_vm0, %v1095_v22, 0.0 }
 0x3e2   : > { %1151 = vadd.xlane.f32.xlu0 %v1150_v11  ;;  %1630 = vadd.xlane.f32.xlu1 %v1629_v1  ;;  %v1336_v28 = vpop.permute.xlu0 %1335 }
 0x3e3   : > { %v1397_v42 = vsel %vm776_vm0, %v1336_v28, 0.0 }
 0x3e6   : > { %1392 = vadd.xlane.f32.xlu0 %v1391_v46  ;;  %1154 = vadd.xlane.f32.xlu1 %v1153_v20  ;;  %v1577_v36 = vpop.permute.xlu0 %1576 }
 0x3e7   : > { %v1638_v18 = vsel %vm776_vm0, %v1577_v36, 0.0 }
 0x3ea   : > { %1633 = vadd.xlane.f32.xlu0 %v1632_v34  ;;  %1395 = vadd.xlane.f32.xlu1 %v1394_v4 }
 0x3ee   : > { %1157 = vadd.xlane.f32.xlu0 %v1156_v15  ;;  %1636 = vadd.xlane.f32.xlu1 %v1635_v19  ;;  %v3244_v49 = vpop.xlane.xlu1 %913 }
 0x3f2   : > { %1398 = vadd.xlane.f32.xlu0 %v1397_v42  ;;  %v1097_v51 = vpop.permute.xlu1 %1096 }
 0x3f3   : > { %v1159_v2 = vsel %vm776_vm0, %v1097_v51, 0.0 }
 0x3f4   : > { %1160 = vadd.xlane.f32.xlu1 %v1159_v2 }
 0x3f6   : > { %1639 = vadd.xlane.f32.xlu0 %v1638_v18  ;;  %v1338_v41 = vpop.permute.xlu1 %1337 }
 0x3f7   : > { %v1400_v3 = vsel %vm776_vm0, %v1338_v41, 0.0 }
 0x3f8   : > { %1401 = vadd.xlane.f32.xlu1 %v1400_v3 }
 0x3fa   : > { %v1579_v38 = vpop.permute.xlu1 %1578 }
 0x3fb   : > { %v1641_v44 = vsel %vm776_vm0, %v1579_v38, 0.0 }
 0x3fc   : > { %1642 = vadd.xlane.f32.xlu1 %v1641_v44 }
 0x417   : > { %v3251_v1 = vpop.xlane.xlu0 %916 }
 0x41b   : > { %v1116_v11 = vpop.xlane.xlu0 %1115 }
 0x41c   : > { %2292 = vrcp.f32 %v1116_v11 }
 0x41d   : > { %2294 = vrcp.f32 %v3143_v5 }
 0x41f   : > { %v1357_v50 = vpop.xlane.xlu0 %1356 }
 0x420   : > { %2296 = vrcp.f32 %v1357_v50 }
 0x423   : > { %v1598_v46 = vpop.xlane.xlu0 %1597 }
 0x424   : > { %2298 = vrcp.f32 %v1598_v46 }
 0x427   : > { %v1122_v20 = vpop.xlane.xlu0 %1121 }
 0x428   : > { %2300 = vrcp.f32 %v1122_v20 }
 0x429   : > { %v2293_v22 = vpop.eup %2292  ;;  %2302 = vrcp.f32 %v3153_v52 }
 0x42a   : > { %v2295_v48 = vpop.eup %2294  ;;  %v1178_v28 = vmul.f32 %v2293_v22, %v2851_v54 }
 0x42b   : > { %v1363_v34 = vpop.xlane.xlu0 %1362  ;;  %v3257_v4 = vpop.xlane.xlu1 %919  ;;  %v937_v36 = vmul.f32 %v2295_v48, %v2875_v10 }
 0x42c   : > { %2304 = vrcp.f32 %v1363_v34 }
 0x42d   : > { %v2297_v5 = vpop.eup %2296  ;;  %v1676_v52 = vsel %vm776_vm0, %v937_v36, %v1178_v28 }
 0x42e   : > { %v1419_v19 = vmul.f32 %v2297_v5, %v2859_v59 }
 0x42f   : > { %v1604_v15 = vpop.xlane.xlu0 %1603  ;;  %v1119_v42 = vpop.xlane.xlu1 %1118 }
 0x430   : > { %2306 = vrcp.f32 %v1604_v15  ;;  %v1693_v59 = vsel %vm1692_vm4, %v1676_v52, %v1419_v19 }
 0x431   : > { %v2299_v51 = vpop.eup %2298  ;;  %2308 = vrcp.f32 %v1119_v42 }
 0x432   : > { %v1660_v54 = vmul.f32 %v2299_v51, %v2867_v62  ;;  %2310 = vrcp.f32 %v3130_v60 }
 0x433   : > { %v1125_v2 = vpop.xlane.xlu0 %1124  ;;  %v1360_v10 = vpop.xlane.xlu1 %1359 }
 0x434   : > { %v1710_v18 = vsel %vm1709_vm5, %v1693_v59, %v1660_v54  ;;  %2312 = vrcp.f32 %v1360_v10 }
 0x435   : > { %1727 = vst.msk [vmem:[%s3266_s24] sm:$0xff] %vm1726_vm6, %v1710_v18  ;;  %2314 = vrcp.f32 %v3168_v16  ;;  %v2301_v41 = vpop.eup %2300 }
 0x436   : > { %2316 = vrcp.f32 %v1125_v2  ;;  %v2303_v44 = vpop.eup %2302  ;;  %v1180_v11 = vmul.f32 %v2301_v41, %v2889_v35 }
 0x437   : > { %v1366_v3 = vpop.xlane.xlu0 %1365  ;;  %v1601_v38 = vpop.xlane.xlu1 %1600  ;;  %v939_v20 = vmul.f32 %v2303_v44, %v2915_v13 }
 0x438   : > { %2318 = vrcp.f32 %v1366_v3 }
 0x439   : > { %v2305_v62 = vpop.eup %2304  ;;  %2320 = vrcp.f32 %v1601_v38  ;;  %v1678_v16 = vsel %vm776_vm0, %v939_v20, %v1180_v11 }
 0x43a   : > { %v1421_v50 = vmul.f32 %v2305_v62, %v2897_v39 }
 0x43b   : > { %v1128_v60 = vpop.xlane.xlu0 %1127  ;;  %v1607_v46 = vpop.xlane.xlu1 %1606 }
 0x43c   : > { %2322 = vrcp.f32 %v1607_v46  ;;  %v1695_v48 = vsel %vm1692_vm4, %v1678_v16, %v1421_v50 }
 0x43d   : > { %v2307_v22 = vpop.eup %2306  ;;  %2324 = vrcp.f32 %v1128_v60 }
 0x43e   : > { %v1662_v34 = vmul.f32 %v2307_v22, %v2891_v37  ;;  %2326 = vrcp.f32 %v3170_v17  ;;  %v2309_v28 = vpop.eup %2308 }
 0x43f   : > { %v1369_v5 = vpop.xlane.xlu0 %1368  ;;  %v1131_v35 = vpop.xlane.xlu1 %1130  ;;  %v1179_v37 = vmul.f32 %v2309_v28, %v2849_v53 }
 0x440   : > { %v1712_v39 = vsel %vm1709_vm5, %v1695_v48, %v1662_v34  ;;  %2328 = vrcp.f32 %v1369_v5  ;;  %v2311_v19 = vpop.eup %2310 }
 0x441   : > { %1729 = vst.msk [vmem:[%s3266_s24 + $0x10] sm:$0xff] %vm1726_vm6, %v1712_v39  ;;  %v2313_v13 = vpop.eup %2312  ;;  %2330 = vrcp.f32 %v3180_v7  ;;  %v938_v54 = vmul.f32 %v2311_v19, %v2880_v57 }
 0x442   : > { %v2315_v15 = vpop.eup %2314  ;;  %2332 = vrcp.f32 %v1131_v35  ;;  %v1420_v51 = vmul.f32 %v2313_v13, %v2857_v58 }
 0x443   : > { %v1610_v42 = vpop.xlane.xlu0 %1609  ;;  %v1372_v17 = vpop.xlane.xlu1 %1371  ;;  %v1677_v2 = vsel %vm776_vm0, %v938_v54, %v1179_v37  ;;  %v940_v58 = vmul.f32 %v2315_v15, %v2923_v12 }
 0x444   : > { %v2317_v36 = vpop.eup %2316  ;;  %2334 = vrcp.f32 %v1610_v42  ;;  %v1694_v41 = vsel %vm1692_vm4, %v1677_v2, %v1420_v51 }
 0x445   : > { %v2319_v52 = vpop.eup %2318  ;;  %2336 = vrcp.f32 %v1372_v17  ;;  %v1181_v7 = vmul.f32 %v2317_v36, %v2901_v40 }
 0x446   : > { %v2321_v59 = vpop.eup %2320  ;;  %v1422_v3 = vmul.f32 %v2319_v52, %v2906_v43 }
 0x447   : > { %v1661_v10 = vmul.f32 %v2321_v59, %v2865_v61  ;;  %v1134_v53 = vpop.xlane.xlu0 %1133  ;;  %v1613_v18 = vpop.xlane.xlu1 %1612  ;;  %v1679_v61 = vsel %vm776_vm0, %v940_v58, %v1181_v7 }
 0x448   : > { %2338 = vrcp.f32 %v1613_v18  ;;  %v1696_v12 = vsel %vm1692_vm4, %v1679_v61, %v1422_v3 }
 0x449   : > { %v1711_v38 = vsel %vm1709_vm5, %v1694_v41, %v1661_v10  ;;  %v2323_v57 = vpop.eup %2322  ;;  %2340 = vrcp.f32 %v1134_v53 }
 0x44a   : > { %1728 = vst.msk [vmem:[%s3266_s24 + $0x8] sm:$0xff] %vm1726_vm6, %v1711_v38  ;;  %v2325_v44 = vpop.eup %2324  ;;  %2342 = vrcp.f32 %v3186_v32  ;;  %v1663_v40 = vmul.f32 %v2323_v57, %v2910_v45  ;;  %v3521_v38 = vld [vmem:[#allocation5_spill] sm:$0xff] }
 0x44b   : > { %v1375_v62 = vpop.xlane.xlu0 %1374  ;;  %v1137_v11 = vpop.xlane.xlu1 %1136  ;;  %v1182_v46 = vmul.f32 %v2325_v44, %v2928_v21  ;;  %v3522_v44 = vld [vmem:[#allocation7_spill] sm:$0xff] }
 0x44c   : > { %v2327_v43 = vpop.eup %2326  ;;  %2344 = vrcp.f32 %v1375_v62  ;;  %v1713_v60 = vsel %vm1709_vm5, %v1696_v12, %v1663_v40 }
 0x44d   : > { %v2329_v50 = vpop.eup %2328  ;;  %2346 = vrcp.f32 %v3197_v30  ;;  %1730 = vst.msk [vmem:[%s3266_s24 + $0x18] sm:$0xff] %vm1726_vm6, %v1713_v60  ;;  %v941_v34 = vmul.f32 %v2327_v43, %v2955_v33 }
 0x44e   : > { %v2331_v32 = vpop.eup %2330  ;;  %v1423_v20 = vmul.f32 %v2329_v50, %v2933_v24  ;;  %2348 = vrcp.f32 %v1137_v11 }
 0x44f   : > { %v1616_v45 = vpop.xlane.xlu0 %1615  ;;  %v1378_v22 = vpop.xlane.xlu1 %1377  ;;  %v1680_v30 = vsel %vm776_vm0, %v941_v34, %v1182_v46  ;;  %v942_v33 = vmul.f32 %v2331_v32, %v2963_v6  ;;  %v3524_v32 = vld [vmem:[#allocation8_spill] sm:$0xff] }
 0x450   : > { %v2333_v16 = vpop.eup %2332  ;;  %2350 = vrcp.f32 %v1616_v45  ;;  %v1697_v35 = vsel %vm1692_vm4, %v1680_v30, %v1423_v20  ;;  %v3525_v45 = vld [vmem:[#allocation9_spill] sm:$0xff] }
 0x451   : > { %v2335_v48 = vpop.eup %2334  ;;  %2352 = vrcp.f32 %v1378_v22  ;;  %v1183_v28 = vmul.f32 %v2333_v16, %v2941_v27 }
 0x452   : > { %v2337_v5 = vpop.eup %2336  ;;  %v1664_v21 = vmul.f32 %v2335_v48, %v2937_v26 }
 0x453   : > { %v1140_v24 = vpop.xlane.xlu0 %1139  ;;  %v1619_v39 = vpop.xlane.xlu1 %1618  ;;  %v1424_v13 = vmul.f32 %v2337_v5, %v2946_v29  ;;  %v1681_v26 = vsel %vm776_vm0, %v942_v33, %v1183_v28  ;;  %v3526_v5 = vld [vmem:[#allocation14_spill] sm:$0xff] }
 0x454   : > { %v1714_v19 = vsel %vm1709_vm5, %v1697_v35, %v1664_v21  ;;  %2354 = vrcp.f32 %v1619_v39  ;;  %v3527_v28 = vld [vmem:[#allocation10_spill] sm:$0xff] }
 0x455   : > { %1731 = vst.msk [vmem:[%s3266_s24 + $0x20] sm:$0xff] %vm1726_vm6, %v1714_v19  ;;  %v2339_v15 = vpop.eup %2338  ;;  %2356 = vrcp.f32 %v1140_v24  ;;  %v1698_v29 = vsel %vm1692_vm4, %v1681_v26, %v1424_v13  ;;  %v3528_v19 = vld [vmem:[#allocation11_spill] sm:$0xff]  ;;  %v3529_v26 = vld [vmem:[#allocation12_spill] sm:$0xff] }
 0x456   : > { %v2341_v37 = vpop.eup %2340  ;;  %2358 = vrcp.f32 %v3204_v9  ;;  %v1665_v27 = vmul.f32 %v2339_v15, %v2950_v31 }
 0x457   : > { %v1381_v42 = vpop.xlane.xlu0 %1380  ;;  %v1143_v17 = vpop.xlane.xlu1 %1142  ;;  %v1184_v52 = vmul.f32 %v2341_v37, %v2968_v14 }
 0x458   : > { %v2343_v36 = vpop.eup %2342  ;;  %2360 = vrcp.f32 %v1381_v42  ;;  %v1715_v51 = vsel %vm1709_vm5, %v1698_v29, %v1665_v27  ;;  %v3530_v42 = vld [vmem:[#allocation15_spill] sm:$0xff] }
 0x459   : > { %v2345_v6 = vpop.eup %2344  ;;  %2362 = vrcp.f32 %v3214_v47  ;;  %1732 = vst.msk [vmem:[%s3266_s24 + $0x28] sm:$0xff] %vm1726_vm6, %v1715_v51  ;;  %v943_v7 = vmul.f32 %v2343_v36, %v2995_v55  ;;  %v3531_v51 = vld [vmem:[#allocation13_spill] sm:$0xff] }
 0x45a   : > { %v2347_v9 = vpop.eup %2346  ;;  %v1425_v54 = vmul.f32 %v2345_v6, %v2973_v0  ;;  %2364 = vrcp.f32 %v1143_v17 }
 0x45b   : > { %v1622_v31 = vpop.xlane.xlu0 %1621  ;;  %v1384_v59 = vpop.xlane.xlu1 %1383  ;;  %v1682_v47 = vsel %vm776_vm0, %v943_v7, %v1184_v52  ;;  %v944_v55 = vmul.f32 %v2347_v9, %v3522_v44  ;;  %v3535_v44 = vld [vmem:[#allocation18_spill] sm:$0xff] }
 0x45c   : > { %v2349_v2 = vpop.eup %2348  ;;  %2366 = vrcp.f32 %v1622_v31  ;;  %v1699_v18 = vsel %vm1692_vm4, %v1682_v47, %v1425_v54  ;;  %v3533_v47 = vld [vmem:[#allocation17_spill] sm:$0xff] }
 0x45d   : > { %v2351_v10 = vpop.eup %2350  ;;  %2368 = vrcp.f32 %v1384_v59  ;;  %v1185_v41 = vmul.f32 %v2349_v2, %v2981_v25  ;;  %v3523_v25 = vld [vmem:[#allocation6_spill] sm:$0xff] }
 0x45e   : > { %v2353_v53 = vpop.eup %2352  ;;  %v1666_v14 = vmul.f32 %v2351_v10, %v2977_v23  ;;  %v3532_v10 = vld [vmem:[#allocation16_spill] sm:$0xff] }
 0x45f   : > { %v1146_v0 = vpop.xlane.xlu0 %1145  ;;  %v1625_v3 = vpop.xlane.xlu1 %1624  ;;  %v1426_v57 = vmul.f32 %v2353_v53, %v3521_v38  ;;  %v1683_v23 = vsel %vm776_vm0, %v944_v55, %v1185_v41 }
 0x460   : > { %v1716_v58 = vsel %vm1709_vm5, %v1699_v18, %v1666_v14  ;;  %2370 = vrcp.f32 %v1625_v3  ;;  %v3534_v3 = vld [vmem:[#allocation22_spill] sm:$0xff] }
 0x461   : > { %1733 = vst.msk [vmem:[%s3266_s24 + $0x30] sm:$0xff] %vm1726_vm6, %v1716_v58  ;;  %v2355_v61 = vpop.eup %2354  ;;  %2372 = vrcp.f32 %v1146_v0  ;;  %v1700_v50 = vsel %vm1692_vm4, %v1683_v23, %v1426_v57 }
 0x462   : > { %v2357_v40 = vpop.eup %2356  ;;  %2374 = vrcp.f32 %v3220_v8  ;;  %v1667_v62 = vmul.f32 %v2355_v61, %v3523_v25 }
 0x463   : > { %v1387_v11 = vpop.xlane.xlu0 %1386  ;;  %v1149_v43 = vpop.xlane.xlu1 %1148  ;;  %v1186_v20 = vmul.f32 %v2357_v40, %v3524_v32  ;;  %v3536_v40 = vld [vmem:[#allocation19_spill] sm:$0xff] }
 0x464   : > { %v2359_v12 = vpop.eup %2358  ;;  %2376 = vrcp.f32 %v1387_v11  ;;  %v1717_v46 = vsel %vm1709_vm5, %v1700_v50, %v1667_v62  ;;  %v3538_v50 = vld [vmem:[#allocation23_spill] sm:$0xff] }
 0x465   : > { %v2361_v60 = vpop.eup %2360  ;;  %2378 = vrcp.f32 %v3228_v56  ;;  %1734 = vst.msk [vmem:[%s3266_s24 + $0x38] sm:$0xff] %vm1726_vm6, %v1717_v46  ;;  %v945_v30 = vmul.f32 %v2359_v12, %v3526_v5 }
 0x466   : > { %v2363_v8 = vpop.eup %2362  ;;  %v1427_v22 = vmul.f32 %v2361_v60, %v3525_v45  ;;  %2380 = vrcp.f32 %v1149_v43  ;;  %v3537_v43 = vld [vmem:[#allocation20_spill] sm:$0xff] }
 0x467   : > { %v1628_v16 = vpop.xlane.xlu0 %1627  ;;  %v1390_v34 = vpop.xlane.xlu1 %1389  ;;  %v1684_v56 = vsel %vm776_vm0, %v945_v30, %v1186_v20  ;;  %v946_v17 = vmul.f32 %v2363_v8, %v3530_v42  ;;  %v3539_v8 = vld [vmem:[#allocation21_spill] sm:$0xff] }
 0x468   : > { %v2365_v48 = vpop.eup %2364  ;;  %2382 = vrcp.f32 %v1628_v16  ;;  %v1701_v39 = vsel %vm1692_vm4, %v1684_v56, %v1427_v22 }
 0x469   : > { %v2367_v21 = vpop.eup %2366  ;;  %2384 = vrcp.f32 %v1390_v34  ;;  %v1187_v13 = vmul.f32 %v2365_v48, %v3528_v19  ;;  %v3542_v19 = vld [vmem:[#allocation30_spill] sm:$0xff] }
 0x46a   : > { %v2369_v35 = vpop.eup %2368  ;;  %v1668_v24 = vmul.f32 %v2367_v21, %v3527_v28  ;;  %v3540_v21 = vld [vmem:[#allocation24_spill] sm:$0xff]  ;;  %v3541_v28 = vld [vmem:[#allocation25_spill] sm:$0xff] }
 0x46b   : > { %v1152_v33 = vpop.xlane.xlu0 %1151  ;;  %v1631_v15 = vpop.xlane.xlu1 %1630  ;;  %v1428_v27 = vmul.f32 %v2369_v35, %v3529_v26  ;;  %v1685_v6 = vsel %vm776_vm0, %v946_v17, %v1187_v13 }
 0x46c   : > { %v1718_v37 = vsel %vm1709_vm5, %v1701_v39, %v1668_v24  ;;  %2386 = vrcp.f32 %v1631_v15 }
 0x46d   : > { %1735 = vst.msk [vmem:[%s3266_s24 + $0x40] sm:$0xff] %vm1726_vm6, %v1718_v37  ;;  %v2371_v36 = vpop.eup %2370  ;;  %2388 = vrcp.f32 %v1152_v33  ;;  %v1702_v59 = vsel %vm1692_vm4, %v1685_v6, %v1428_v27  ;;  %v3543_v27 = vld [vmem:[#allocation26_spill] sm:$0xff] }
 0x46e   : > { %v2373_v29 = vpop.eup %2372  ;;  %2390 = vrcp.f32 %v3234_v63  ;;  %v1669_v52 = vmul.f32 %v2371_v36, %v3531_v51  ;;  %v3544_v36 = vld [vmem:[#allocation27_spill] sm:$0xff]  ;;  %v3545_v51 = vld [vmem:[#allocation28_spill] sm:$0xff] }
 0x46f   : > { %v1393_v9 = vpop.xlane.xlu0 %1392  ;;  %v1155_v54 = vpop.xlane.xlu1 %1154  ;;  %v1188_v53 = vmul.f32 %v2373_v29, %v3532_v10 }
 0x470   : > { %v2375_v31 = vpop.eup %2374  ;;  %2392 = vrcp.f32 %v1393_v9  ;;  %v1719_v7 = vsel %vm1709_vm5, %v1702_v59, %v1669_v52  ;;  %v3546_v9 = vld [vmem:[#allocation31_spill] sm:$0xff] }
 0x471   : > { %v2377_v2 = vpop.eup %2376  ;;  %2394 = vrcp.f32 %v3244_v49  ;;  %1736 = vst.msk [vmem:[%s3266_s24 + $0x48] sm:$0xff] %vm1726_vm6, %v1719_v7  ;;  %v947_v58 = vmul.f32 %v2375_v31, %v3534_v3  ;;  %v3547_v7 = vld [vmem:[#allocation29_spill] sm:$0xff] }
 0x472   : > { %v2379_v63 = vpop.eup %2378  ;;  %v1429_v14 = vmul.f32 %v2377_v2, %v3533_v47  ;;  %2396 = vrcp.f32 %v1155_v54 }
 0x473   : > { %v1634_v18 = vpop.xlane.xlu0 %1633  ;;  %v1396_v41 = vpop.xlane.xlu1 %1395  ;;  %v1686_v49 = vsel %vm776_vm0, %v947_v58, %v1188_v53  ;;  %v948_v60 = vmul.f32 %v2379_v63, %v3538_v50 }
 0x474   : > { %v2381_v0 = vpop.eup %2380  ;;  %2398 = vrcp.f32 %v1634_v18  ;;  %v1703_v61 = vsel %vm1692_vm4, %v1686_v49, %v1429_v14  ;;  %v3548_v18 = vld [vmem:[#allocation32_spill] sm:$0xff] }
 0x475   : > { %v2383_v38 = vpop.eup %2382  ;;  %2400 = vrcp.f32 %v1396_v41  ;;  %v1189_v23 = vmul.f32 %v2381_v0, %v3536_v40  ;;  %v3549_v0 = vld [vmem:[#allocation33_spill] sm:$0xff] }
 0x476   : > { %v2385_v57 = vpop.eup %2384  ;;  %v1670_v55 = vmul.f32 %v2383_v38, %v3535_v44  ;;  %v3550_v38 = vld [vmem:[#allocation38_spill] sm:$0xff] }
 0x477   : > { %v1158_v25 = vpop.xlane.xlu0 %1157  ;;  %v1637_v62 = vpop.xlane.xlu1 %1636  ;;  %v1430_v12 = vmul.f32 %v2385_v57, %v3537_v43  ;;  %v1687_v20 = vsel %vm776_vm0, %v948_v60, %v1189_v23  ;;  %v3554_v60 = vld [vmem:[#allocation39_spill] sm:$0xff] }
 0x478   : > { %v1720_v11 = vsel %vm1709_vm5, %v1703_v61, %v1670_v55  ;;  %2402 = vrcp.f32 %v1637_v62  ;;  %v3551_v61 = vld [vmem:[#allocation34_spill] sm:$0xff]  ;;  %v3552_v62 = vld [vmem:[#allocation35_spill] sm:$0xff] }
 0x479   : > { %1737 = vst.msk [vmem:[%s3266_s24 + $0x50] sm:$0xff] %vm1726_vm6, %v1720_v11  ;;  %v2387_v46 = vpop.eup %2386  ;;  %2404 = vrcp.f32 %v1158_v25  ;;  %v1704_v34 = vsel %vm1692_vm4, %v1687_v20, %v1430_v12  ;;  %v3553_v12 = vld [vmem:[#allocation36_spill] sm:$0xff] }
 0x47a   : > { %v2389_v32 = vpop.eup %2388  ;;  %2406 = vrcp.f32 %v3251_v1  ;;  %v1671_v45 = vmul.f32 %v2387_v46, %v3539_v8  ;;  %v3555_v8 = vld [vmem:[#allocation37_spill] sm:$0xff] }
 0x47b   : > { %v1399_v22 = vpop.xlane.xlu0 %1398  ;;  %v2391_v16 = vpop.eup %2390  ;;  %v1190_v35 = vmul.f32 %v2389_v32, %v3540_v21 }
 0x47c   : > { %2408 = vrcp.f32 %v1399_v22  ;;  %v1721_v5 = vsel %vm1709_vm5, %v1704_v34, %v1671_v45  ;;  %v949_v13 = vmul.f32 %v2391_v16, %v3542_v19 }
 0x47d   : > { %v2393_v48 = vpop.eup %2392  ;;  %v1161_v30 = vpop.xlane.xlu1 %1160  ;;  %1738 = vst.msk [vmem:[%s3266_s24 + $0x58] sm:$0xff] %vm1726_vm6, %v1721_v5 }
 0x47e   : > { %v2395_v56 = vpop.eup %2394  ;;  %v1431_v1 = vmul.f32 %v2393_v48, %v3541_v28  ;;  %2410 = vrcp.f32 %v1161_v30  ;;  %v1688_v26 = vsel %vm776_vm0, %v949_v13, %v1190_v35 }
 0x47f   : > { %v1640_v24 = vpop.xlane.xlu0 %1639  ;;  %v2397_v39 = vpop.eup %2396  ;;  %v950_v54 = vmul.f32 %v2395_v56, %v3546_v9 }
 0x480   : > { %2412 = vrcp.f32 %v1640_v24  ;;  %v1705_v17 = vsel %vm1692_vm4, %v1688_v26, %v1431_v1  ;;  %v1191_v29 = vmul.f32 %v2397_v39, %v3544_v36 }
 0x481   : > { %v2399_v33 = vpop.eup %2398  ;;  %2414 = vrcp.f32 %v3257_v4  ;;  %v1402_v15 = vpop.xlane.xlu1 %1401 }
 0x482   : > { %v2401_v37 = vpop.eup %2400  ;;  %v1672_v42 = vmul.f32 %v2399_v33, %v3543_v27  ;;  %2416 = vrcp.f32 %v1402_v15  ;;  %v1689_v2 = vsel %vm776_vm0, %v950_v54, %v1191_v29 }
 0x483   : > { %v1432_v52 = vmul.f32 %v2401_v37, %v3545_v51 }
 0x484   : > { %v1722_v6 = vsel %vm1709_vm5, %v1705_v17, %v1672_v42 }
 0x485   : > { %1739 = vst.msk [vmem:[%s3266_s24 + $0x60] sm:$0xff] %vm1726_vm6, %v1722_v6  ;;  %v1643_v4 = vpop.xlane.xlu1 %1642  ;;  %v2403_v31 = vpop.eup %2402  ;;  %v1706_v63 = vsel %vm1692_vm4, %v1689_v2, %v1432_v52 }
 0x486   : > { %2418 = vrcp.f32 %v1643_v4  ;;  %v2405_v59 = vpop.eup %2404  ;;  %v1673_v10 = vmul.f32 %v2403_v31, %v3547_v7 }
 0x487   : > { %v2407_v53 = vpop.eup %2406  ;;  %v1192_v41 = vmul.f32 %v2405_v59, %v3548_v18 }
 0x488   : > { %v1723_v14 = vsel %vm1709_vm5, %v1706_v63, %v1673_v10  ;;  %v951_v57 = vmul.f32 %v2407_v53, %v3550_v38 }
 0x489   : > { %v2409_v47 = vpop.eup %2408  ;;  %1740 = vst.msk [vmem:[%s3266_s24 + $0x68] sm:$0xff] %vm1726_vm6, %v1723_v14 }
 0x48a   : > { %v1433_v3 = vmul.f32 %v2409_v47, %v3549_v0  ;;  %v1690_v55 = vsel %vm776_vm0, %v951_v57, %v1192_v41 }
 0x48b   : > { %v2411_v58 = vpop.eup %2410 }
 0x48c   : > { %v1707_v25 = vsel %vm1692_vm4, %v1690_v55, %v1433_v3  ;;  %v1193_v11 = vmul.f32 %v2411_v58, %v3552_v62 }
 0x48d   : > { %v2413_v49 = vpop.eup %2412 }
 0x48e   : > { %v2415_v44 = vpop.eup %2414  ;;  %v1674_v40 = vmul.f32 %v2413_v49, %v3551_v61 }
 0x48f   : > { %v2417_v23 = vpop.eup %2416  ;;  %v952_v46 = vmul.f32 %v2415_v44, %v3554_v60 }
 0x490   : > { %v1724_v43 = vsel %vm1709_vm5, %v1707_v25, %v1674_v40  ;;  %v1434_v50 = vmul.f32 %v2417_v23, %v3553_v12 }
 0x491   : > { %1741 = vst.msk [vmem:[%s3266_s24 + $0x70] sm:$0xff] %vm1726_vm6, %v1724_v43  ;;  %v1691_v20 = vsel %vm776_vm0, %v952_v46, %v1193_v11 }
 0x492   : > { %v1708_v22 = vsel %vm1692_vm4, %v1691_v20, %v1434_v50 }
 0x493   : > { %v2419_v32 = vpop.eup %2418 }
 0x494   : > { %v1675_v45 = vmul.f32 %v2419_v32, %v3555_v8 }
 0x496   : > { %v1725_v16 = vsel %vm1709_vm5, %v1708_v22, %v1675_v45 }
 0x497   : > { %1742 = vst.msk [vmem:[%s3266_s24 + $0x78] sm:$0xff] %vm1726_vm6, %v1725_v16 }
 0x498 PF: > { %s15_s16 = sadd.s32 1, %s2514_s16   ;;  %s3556_s9 = smov %s2490_s10 }
 0x499   : > { %p12_p10 = scmp.ge.s32.totalorder %s15_s16, 6   ;;  %s3557_s10 = smov %s2494_s11 }
 0x49a   : > { %s3558_s11 = smov %s2603_s28  ;;  %s3559_s12 = smov %s2506_s14 }
 0x49b   : > { %s3560_s13 = smov %s2510_s15  ;;  %s3561_s14 = smov %s3564_s18 }
 0x49c   : > { %s3562_s15 = smov %s3568_s19  ;;  %14 = sbr.rel (!%p12_p10) target bundleno = 5 (0x5), region = 71 }
 0x4a1   :  { %1773 = vsyncpa [#allocation3], 1 }
 0x4a2   :  { %1775 = vsyncpa [#allocation3 + $0x1], 1 }

</bundles_post_ra>
